<compile_context>
chip_gen: v6e
topology: v6e:2x2x1
jax: 0.10.0
libtpu: 0.0.40
codegen_flags: <defaults>
</compile_context>

<pallas_src>
import functools

import jax
import jax.numpy as jnp
from jax import lax
from jax.experimental import pallas as pl
from jax.experimental.pallas import tpu as pltpu


# ----------------------------------------------------------------------------
# Kernel helpers
# ----------------------------------------------------------------------------
def _zero_halo(pad_ref, Hc, Wc, C):
    """Zero only the 1-pixel halo of a (nb, Hc+2, Wc+2, C) padded scratch.

    The interior is fully overwritten every step, so zeroing it would be
    wasted vector-store slots (the first slot to saturate on v5e).
    """
    nb = pad_ref.shape[0]
    zrow = jnp.zeros((nb, 1, Wc + 2, C), pad_ref.dtype)
    pad_ref[:, pl.ds(0, 1), :, :] = zrow
    pad_ref[:, pl.ds(Hc + 1, 1), :, :] = zrow
    zcol = jnp.zeros((nb, Hc, 1, C), pad_ref.dtype)
    pad_ref[:, pl.ds(1, Hc), pl.ds(0, 1), :] = zcol
    pad_ref[:, pl.ds(1, Hc), pl.ds(Wc + 1, 1), :] = zcol


def _conv3x3_bn_relu(pad_ref, w_ref, s_ref, t_ref, nb, Hc, Wc, Cin):
    """3x3 'same' conv by accumulating nine (M, Cin) @ (Cin, Cout) matmuls.

    pad_ref: (nb, Hc+2, Wc+2, Cin) bf16, halo zeroed, interior = input.
    w_ref:   (9*Cin, Cout) bf16 im2col weight, row = (kh*3+kw)*Cin + cin.
    Accumulation is f32; folded BatchNorm + ReLU applied on the accumulator.
    MXU has slack at these Cout, so the smaller per-tap K is effectively free
    and the materialised 9*Cin-wide patch matrix / lane concat is gone.
    """
    M = nb * Hc * Wc
    acc = None
    for kh in range(3):
        for kw in range(3):
            tap = kh * 3 + kw
            x_tap = pad_ref[:, pl.ds(kh, Hc), pl.ds(kw, Wc), :].reshape(M, Cin)
            y = jnp.dot(x_tap, w_ref[pl.ds(tap * Cin, Cin), :],
                        preferred_element_type=jnp.float32)
            acc = y if acc is None else acc + y
    return jnp.maximum(acc * s_ref[0] + t_ref[0], 0.0)


# ----------------------------------------------------------------------------
# Fused kernel: conv2 -> BN2 -> ReLU -> pool -> conv3 -> BN3 -> ReLU -> GAP -> FC
# ----------------------------------------------------------------------------
def fused_cnn_kernel(a1_ref, w2_ref, s2_ref, t2_ref,
                     w3_ref, s3_ref, t3_ref,
                     wfc_ref, bfc_ref,
                     o_ref,
                     pad2_ref, pad3_ref,
                     *, H2, W2):
    """One batch chunk, VMEM-resident end to end.

    a1_ref:  (nb, H2, W2, 32) bf16   pooled conv1 activation (the only
                                     per-step streamed HBM operand)
    w*_ref:  (9*Cin, Cout) bf16      conv weights in im2col layout
    s*/t*:   (1, Cout) f32           folded BN scale / shift
    wfc/bfc: (128, nc) bf16 / (1, nc) f32  (GAP 1/(H3*W3) folded into wfc)
    o_ref:   (1, nb, nc) f32
    pad2/3:  bf16 VMEM scratch for the 'same' padding of conv2 / conv3
    """
    NB = a1_ref.shape[0]
    H3, W3 = H2 // 2, W2 // 2

    def maxpool2x2(y, Hc, Wc):
        # y: (NB*Hc*Wc, C), rows in (n, h, w) order; Hc, Wc even.
        C = y.shape[-1]
        y = y.reshape(NB * Hc // 2, 2, Wc, C).max(axis=1)
        y = y.reshape(NB * Hc // 2, Wc // 2, 2, C).max(axis=2)
        return y.reshape(NB, Hc // 2, Wc // 2, C)

    # ---- conv2: bf16 halo-padded scratch, accumulate over taps ----
    _zero_halo(pad2_ref, H2, W2, 32)
    pad2_ref[:, pl.ds(1, H2), pl.ds(1, W2), :] = a1_ref[...]
    y2 = _conv3x3_bn_relu(pad2_ref, w2_ref, s2_ref, t2_ref,
                          NB, H2, W2, 32)                    # (NB*H2*W2, 64) f32
    a2 = maxpool2x2(y2, H2, W2)                              # (NB, H3, W3, 64) f32

    # ---- conv3 ----
    _zero_halo(pad3_ref, H3, W3, 64)
    pad3_ref[:, pl.ds(1, H3), pl.ds(1, W3), :] = a2.astype(pad3_ref.dtype)
    y3 = _conv3x3_bn_relu(pad3_ref, w3_ref, s3_ref, t3_ref,
                          NB, H3, W3, 64)                    # (NB*H3*W3, 128) f32

    # ---- head: global average pool (scale folded into wfc) + FC ----
    # TODO(synk): nn.Dropout(0.5) is identity in eval mode; training-mode RNG mask not implemented.
    pooled = jnp.sum(y3.reshape(NB, H3 * W3, 128), axis=1)   # (NB, 128) f32
    out = jnp.dot(pooled.astype(jnp.bfloat16), wfc_ref[...],
                  preferred_element_type=jnp.float32) + bfc_ref[...]
    o_ref[...] = out[None].astype(o_ref.dtype)


# ----------------------------------------------------------------------------
# Wrapper
# ----------------------------------------------------------------------------
def _conv1_bn_relu_pool(x_nhwc, w1_flat, s1, t1):
    """Layer 1 (<2% of the model's FLOPs) at the JAX boundary (per perf review).

    Keeping it out of the kernel removes the lane-width-9 patch operand and
    the largest in-kernel intermediate; the kernel's streamed input becomes
    the pooled bf16 activation.
    """
    w1 = w1_flat.reshape(3, 3, 1, -1)
    y = lax.conv_general_dilated(x_nhwc, w1, (1, 1), "SAME",
                                 dimension_numbers=("NHWC", "HWIO", "NHWC"))
    y = jnp.maximum(y * s1 + t1, 0.0)
    N, H, W, C = y.shape
    a1 = y.reshape(N, H // 2, 2, W // 2, 2, C).max(axis=(2, 4))
    return a1.astype(jnp.bfloat16)                           # (N, H/2, W/2, 32)


def _pick_batch_chunk(N, H2, W2):
    H3, W3 = H2 // 2, W2 // 2
    # v6e/v7x: aim for ~256-row MXU passes on conv3.  Keep the grid >= 2 so
    # both v7x TensorCores get work and input DMA overlaps compute.
    target = max(1, 256 // (H3 * W3))
    target = min(target, max(1, N // 2))
    # Rough per-image VMEM bytes: keep the chunk well under the scoped limit
    # (v7x has only 64 MiB physical VMEM per TensorCore).
    per_img = (2 * H2 * W2 * 32 * 2              # a1 input, double-buffered bf16
               + (H2 + 2) * (W2 + 2) * 32 * 2    # pad2 scratch bf16
               + (H3 + 2) * (W3 + 2) * 64 * 2    # pad3 scratch bf16
               + H2 * W2 * 64 * (4 + 2)          # y2 f32 acc + bf16 tap window
               + H3 * W3 * 128 * (4 + 2))        # y3 f32 acc + bf16 tap window
    target = max(1, min(target, (24 * 1024 * 1024) // per_img))
    for nb in range(target, 0, -1):              # largest divisor of N <= target
        if N % nb == 0:
            return nb
    return 1


def animaux_cnn_forward(x_nchw, params, *, batch_chunk=None):
    # PyTorch NCHW -> NHWC at the boundary (channels -> lanes).
    x = jnp.transpose(x_nchw, (0, 2, 3, 1)).astype(jnp.float32)
    N, H, W, Cin = x.shape
    assert Cin == 1, "Animaux_CNN.conv1 expects a single input channel"
    assert H % 4 == 0 and W % 4 == 0, "two 2x2 max-pools need H, W % 4 == 0"
    H2, W2, H3, W3 = H // 2, W // 2, H // 4, W // 4
    num_classes = params["wfc"].shape[-1]

    # Layer 1 at the boundary; kernel input is the pooled bf16 activation.
    a1 = _conv1_bn_relu_pool(x, params["w1"], params["s1"], params["t1"])

    nb = batch_chunk if batch_chunk is not None else _pick_batch_chunk(N, H2, W2)
    assert N % nb == 0, "batch must be divisible by the batch chunk"
    grid_n = N // nb

    # bf16 MXU operands; BN scale/shift and FC bias stay f32.
    w2 = params["w2"].astype(jnp.bfloat16)
    w3 = params["w3"].astype(jnp.bfloat16)
    s2, t2, s3, t3 = params["s2"], params["t2"], params["s3"], params["t3"]
    # Fold the global-average 1/(H3*W3) into the FC weight.
    wfc = (params["wfc"] * (1.0 / float(H3 * W3))).astype(jnp.bfloat16)
    bfc = params["bfc"]

    kernel = functools.partial(fused_cnn_kernel, H2=H2, W2=W2)
    rep = lambda n: (0, 0)   # replicated (weight / scale) operands

    out3 = pl.pallas_call(
        kernel,
        # 3-D output so the last two block dims always equal the full dims.
        out_shape=jax.ShapeDtypeStruct((grid_n, nb, num_classes), jnp.float32),
        grid=(grid_n,),
        in_specs=[
            pl.BlockSpec((nb, H2, W2, 32), lambda n: (n, 0, 0, 0)),
            pl.BlockSpec(w2.shape, rep),
            pl.BlockSpec(s2.shape, rep),
            pl.BlockSpec(t2.shape, rep),
            pl.BlockSpec(w3.shape, rep),
            pl.BlockSpec(s3.shape, rep),
            pl.BlockSpec(t3.shape, rep),
            pl.BlockSpec(wfc.shape, rep),
            pl.BlockSpec(bfc.shape, rep),
        ],
        out_specs=pl.BlockSpec((1, nb, num_classes), lambda n: (n, 0, 0)),
        scratch_shapes=[
            pltpu.VMEM((nb, H2 + 2, W2 + 2, 32), jnp.bfloat16),  # conv2 padded in
            pltpu.VMEM((nb, H3 + 2, W3 + 2, 64), jnp.bfloat16),  # conv3 padded in
        ],
        compiler_params=pltpu.CompilerParams(
            dimension_semantics=("parallel",),        # shard batch chunks (v7x)
            vmem_limit_bytes=48 * 1024 * 1024,        # within v7x 64 MiB physical
        ),
    )(a1, w2, s2, t2, w3, s3, t3, wfc, bfc)

    return out3.reshape(N, num_classes)


# ----------------------------------------------------------------------------
# Deterministic synthetic parameters (shapes from Animaux_CNN.__init__)
# Conv weights stored in im2col layout: (9*Cin, Cout), row = (kh*3+kw)*Cin+cin.
# ----------------------------------------------------------------------------
def init_params(key, num_classes):
    eps = 1e-5
    keys = jax.random.split(key, 20)
    ki = iter(range(20))
    params = {}
    for li, (cin, cout) in enumerate([(1, 32), (32, 64), (64, 128)], start=1):
        w = jax.random.normal(keys[next(ki)], (3, 3, cin, cout), jnp.float32)
        w = w * (1.0 / (3.0 * float(cin) ** 0.5))
        b = 0.05 * jax.random.normal(keys[next(ki)], (cout,), jnp.float32)
        gamma = 1.0 + 0.1 * jax.random.normal(keys[next(ki)], (cout,), jnp.float32)
        beta = 0.1 * jax.random.normal(keys[next(ki)], (cout,), jnp.float32)
        mean = 0.1 * jax.random.normal(keys[next(ki)], (cout,), jnp.float32)
        var = 0.5 + jax.random.uniform(keys[next(ki)], (cout,), jnp.float32)
        scale = gamma / jnp.sqrt(var + eps)
        shift = beta + scale * (b - mean)                     # folds conv bias
        params[f"w{li}"] = w.reshape(9 * cin, cout)
        params[f"s{li}"] = scale.reshape(1, cout)
        params[f"t{li}"] = shift.reshape(1, cout)
    wfc = jax.random.normal(keys[next(ki)], (128, num_classes), jnp.float32)
    params["wfc"] = wfc * (1.0 / 128.0 ** 0.5)
    params["bfc"] = 0.05 * jax.random.normal(
        keys[next(ki)], (1, num_classes), jnp.float32)
    return params


# ----------------------------------------------------------------------------
# Pure-JAX reference (all-f32) for correctness check
# ----------------------------------------------------------------------------
def reference_forward(x_nchw, params):
    x = jnp.transpose(x_nchw, (0, 2, 3, 1))

    def conv_bn_relu(x, w_flat, s, t):
        cout = w_flat.shape[-1]
        cin = w_flat.shape[0] // 9
        w = w_flat.reshape(3, 3, cin, cout)
        y = jax.lax.conv_general_dilated(
            x, w, (1, 1), "SAME",
            dimension_numbers=("NHWC", "HWIO", "NHWC"))
        return jnp.maximum(y * s + t, 0.0)

    def maxpool(x):
        N, H, W, C = x.shape
        return x.reshape(N, H // 2, 2, W // 2, 2, C).max(axis=(2, 4))

    x = maxpool(conv_bn_relu(x, params["w1"], params["s1"], params["t1"]))
    x = maxpool(conv_bn_relu(x, params["w2"], params["s2"], params["t2"]))
    x = conv_bn_relu(x, params["w3"], params["s3"], params["t3"])
    pooled = x.mean(axis=(1, 2))
    return pooled @ params["wfc"] + params["bfc"]


if __name__ == "__main__":
    num_classes = 10
    key = jax.random.PRNGKey(0)
    pkey, xkey = jax.random.split(key)
    params = init_params(pkey, num_classes)

    # NCHW input, single channel (conv1 expects Cin=1), small spatial size.
    x = jax.random.normal(xkey, (2, 1, 16, 16), jnp.float32)

    out = jax.block_until_ready(jax.jit(animaux_cnn_forward)(x, params))

    ref = reference_forward(x, params)
    assert out.shape == (2, num_classes), out.shape
    # bf16 MXU operands / bf16 pad scratch vs an all-f32 reference.
    max_err = float(jnp.max(jnp.abs(out - ref)))
    assert jnp.allclose(out, ref, rtol=5e-2, atol=5e-2), f"max abs err {max_err}"

    print("KERNEL_OK")
</pallas_src>

<mosaic_0001>
module attributes {stable_mosaic.version = 11 : i64} {
  func.func @fused_cnn_kernel(%arg0: i32, %arg1: memref<1x8x8x32xbf16, #tpu.memory_space<vmem>>, %arg2: memref<288x64xbf16, #tpu.memory_space<vmem>>, %arg3: memref<1x64xf32, #tpu.memory_space<vmem>>, %arg4: memref<1x64xf32, #tpu.memory_space<vmem>>, %arg5: memref<576x128xbf16, #tpu.memory_space<vmem>>, %arg6: memref<1x128xf32, #tpu.memory_space<vmem>>, %arg7: memref<1x128xf32, #tpu.memory_space<vmem>>, %arg8: memref<128x10xbf16, #tpu.memory_space<vmem>>, %arg9: memref<1x10xf32, #tpu.memory_space<vmem>>, %arg10: memref<1x1x10xf32, #tpu.memory_space<vmem>>, %arg11: memref<1x10x10x32xbf16, #tpu.memory_space<vmem>>, %arg12: memref<1x6x6x64xbf16, #tpu.memory_space<vmem>>) attributes {dimension_semantics = [#tpu.dimension_semantics<parallel>], iteration_bounds = array<i64: 2>, scalar_prefetch = 0 : i64, scratch_operands = 2 : i64, tpu.core_type = #tpu.core_type<tc>, window_params = [{transform_indices = @transform_0, window_bounds = array<i64: 1, 8, 8, 32>}, {pipeline_mode = #tpu.pipeline_mode<synchronous>, transform_indices = @transform_1, window_bounds = array<i64: 288, 64>}, {pipeline_mode = #tpu.pipeline_mode<synchronous>, transform_indices = @transform_2, window_bounds = array<i64: 1, 64>}, {pipeline_mode = #tpu.pipeline_mode<synchronous>, transform_indices = @transform_3, window_bounds = array<i64: 1, 64>}, {pipeline_mode = #tpu.pipeline_mode<synchronous>, transform_indices = @transform_4, window_bounds = array<i64: 576, 128>}, {pipeline_mode = #tpu.pipeline_mode<synchronous>, transform_indices = @transform_5, window_bounds = array<i64: 1, 128>}, {pipeline_mode = #tpu.pipeline_mode<synchronous>, transform_indices = @transform_6, window_bounds = array<i64: 1, 128>}, {pipeline_mode = #tpu.pipeline_mode<synchronous>, transform_indices = @transform_7, window_bounds = array<i64: 128, 10>}, {pipeline_mode = #tpu.pipeline_mode<synchronous>, transform_indices = @transform_8, window_bounds = array<i64: 1, 10>}, {transform_indices = @transform_9, window_bounds = array<i64: 1, 1, 10>}]} {
    %cst = arith.constant 0.000000e+00 : bf16
    %0 = vector.broadcast %cst : bf16 to vector<1x1x10x32xbf16>
    %c0 = arith.constant 0 : index
    %c0_0 = arith.constant 0 : index
    %c0_1 = arith.constant 0 : index
    %c0_2 = arith.constant 0 : index
    %1 = vector.load %arg11[%c0, %c0_0, %c0_1, %c0_2] : memref<1x10x10x32xbf16, #tpu.memory_space<vmem>>, vector<1x1x10x32xbf16>
    tpu.vector_store %arg11[%c0, %c0_0, %c0_1, %c0_2], %0 {strides = array<i32>} : memref<1x10x10x32xbf16, #tpu.memory_space<vmem>>, vector<1x1x10x32xbf16>,
    %c0_3 = arith.constant 0 : index
    %c9 = arith.constant 9 : index
    %c0_4 = arith.constant 0 : index
    %c0_5 = arith.constant 0 : index
    %2 = vector.load %arg11[%c0_3, %c9, %c0_4, %c0_5] : memref<1x10x10x32xbf16, #tpu.memory_space<vmem>>, vector<1x1x10x32xbf16>
    tpu.vector_store %arg11[%c0_3, %c9, %c0_4, %c0_5], %0 {strides = array<i32>} : memref<1x10x10x32xbf16, #tpu.memory_space<vmem>>, vector<1x1x10x32xbf16>,
    %cst_6 = arith.constant 0.000000e+00 : bf16
    %3 = vector.broadcast %cst_6 : bf16 to vector<1x8x1x32xbf16>
    %c0_7 = arith.constant 0 : index
    %c1 = arith.constant 1 : index
    %c0_8 = arith.constant 0 : index
    %c0_9 = arith.constant 0 : index
    %4 = vector.load %arg11[%c0_7, %c1, %c0_8, %c0_9] : memref<1x10x10x32xbf16, #tpu.memory_space<vmem>>, vector<1x8x1x32xbf16>
    tpu.vector_store %arg11[%c0_7, %c1, %c0_8, %c0_9], %3 {strides = array<i32>} : memref<1x10x10x32xbf16, #tpu.memory_space<vmem>>, vector<1x8x1x32xbf16>,
    %c0_10 = arith.constant 0 : index
    %c1_11 = arith.constant 1 : index
    %c9_12 = arith.constant 9 : index
    %c0_13 = arith.constant 0 : index
    %5 = vector.load %arg11[%c0_10, %c1_11, %c9_12, %c0_13] : memref<1x10x10x32xbf16, #tpu.memory_space<vmem>>, vector<1x8x1x32xbf16>
    tpu.vector_store %arg11[%c0_10, %c1_11, %c9_12, %c0_13], %3 {strides = array<i32>} : memref<1x10x10x32xbf16, #tpu.memory_space<vmem>>, vector<1x8x1x32xbf16>,
    %c0_14 = arith.constant 0 : index
    %c0_15 = arith.constant 0 : index
    %c0_16 = arith.constant 0 : index
    %c0_17 = arith.constant 0 : index
    %6 = vector.load %arg1[%c0_14, %c0_15, %c0_16, %c0_17] : memref<1x8x8x32xbf16, #tpu.memory_space<vmem>>, vector<1x8x8x32xbf16>
    %c0_18 = arith.constant 0 : index
    %c1_19 = arith.constant 1 : index
    %c1_20 = arith.constant 1 : index
    %c0_21 = arith.constant 0 : index
    %7 = vector.load %arg11[%c0_18, %c1_19, %c1_20, %c0_21] : memref<1x10x10x32xbf16, #tpu.memory_space<vmem>>, vector<1x8x8x32xbf16>
    tpu.vector_store %arg11[%c0_18, %c1_19, %c1_20, %c0_21], %6 {strides = array<i32>} : memref<1x10x10x32xbf16, #tpu.memory_space<vmem>>, vector<1x8x8x32xbf16>,
    %c0_22 = arith.constant 0 : index
    %c0_23 = arith.constant 0 : index
    %c0_24 = arith.constant 0 : index
    %c0_25 = arith.constant 0 : index
    %8 = vector.load %arg11[%c0_22, %c0_23, %c0_24, %c0_25] : memref<1x10x10x32xbf16, #tpu.memory_space<vmem>>, vector<1x8x8x32xbf16>
    %9 = vector.shape_cast %8 : vector<1x8x8x32xbf16> to vector<64x32xbf16>
    %c0_26 = arith.constant 0 : index
    %c0_27 = arith.constant 0 : index
    %10 = vector.load %arg2[%c0_26, %c0_27] : memref<288x64xbf16, #tpu.memory_space<vmem>>, vector<32x64xbf16>
    %cst_28 = arith.constant dense<0.000000e+00> : vector<64x64xf32>
    %11 = tpu.matmul %9, %10, %cst_28 {dimension_numbers = #tpu.dot_dimension_numbers<[1], [0], [0], [1], [0, 0, 1, 1], [], []>} : vector<64x32xbf16>, vector<32x64xbf16>, vector<64x64xf32> -> vector<64x64xf32>
    %c0_29 = arith.constant 0 : index
    %c0_30 = arith.constant 0 : index
    %c1_31 = arith.constant 1 : index
    %c0_32 = arith.constant 0 : index
    %12 = vector.load %arg11[%c0_29, %c0_30, %c1_31, %c0_32] : memref<1x10x10x32xbf16, #tpu.memory_space<vmem>>, vector<1x8x8x32xbf16>
    %13 = vector.shape_cast %12 : vector<1x8x8x32xbf16> to vector<64x32xbf16>
    %c32 = arith.constant 32 : index
    %c0_33 = arith.constant 0 : index
    %14 = vector.load %arg2[%c32, %c0_33] : memref<288x64xbf16, #tpu.memory_space<vmem>>, vector<32x64xbf16>
    %cst_34 = arith.constant dense<0.000000e+00> : vector<64x64xf32>
    %15 = tpu.matmul %13, %14, %cst_34 {dimension_numbers = #tpu.dot_dimension_numbers<[1], [0], [0], [1], [0, 0, 1, 1], [], []>} : vector<64x32xbf16>, vector<32x64xbf16>, vector<64x64xf32> -> vector<64x64xf32>
    %16 = arith.addf %11, %15 : vector<64x64xf32>
    %c0_35 = arith.constant 0 : index
    %c0_36 = arith.constant 0 : index
    %c2 = arith.constant 2 : index
    %c0_37 = arith.constant 0 : index
    %17 = vector.load %arg11[%c0_35, %c0_36, %c2, %c0_37] : memref<1x10x10x32xbf16, #tpu.memory_space<vmem>>, vector<1x8x8x32xbf16>
    %18 = vector.shape_cast %17 : vector<1x8x8x32xbf16> to vector<64x32xbf16>
    %c64 = arith.constant 64 : index
    %c0_38 = arith.constant 0 : index
    %19 = vector.load %arg2[%c64, %c0_38] : memref<288x64xbf16, #tpu.memory_space<vmem>>, vector<32x64xbf16>
    %cst_39 = arith.constant dense<0.000000e+00> : vector<64x64xf32>
    %20 = tpu.matmul %18, %19, %cst_39 {dimension_numbers = #tpu.dot_dimension_numbers<[1], [0], [0], [1], [0, 0, 1, 1], [], []>} : vector<64x32xbf16>, vector<32x64xbf16>, vector<64x64xf32> -> vector<64x64xf32>
    %21 = arith.addf %16, %20 : vector<64x64xf32>
    %c0_40 = arith.constant 0 : index
    %c1_41 = arith.constant 1 : index
    %c0_42 = arith.constant 0 : index
    %c0_43 = arith.constant 0 : index
    %22 = vector.load %arg11[%c0_40, %c1_41, %c0_42, %c0_43] : memref<1x10x10x32xbf16, #tpu.memory_space<vmem>>, vector<1x8x8x32xbf16>
    %23 = vector.shape_cast %22 : vector<1x8x8x32xbf16> to vector<64x32xbf16>
    %c96 = arith.constant 96 : index
    %c0_44 = arith.constant 0 : index
    %24 = vector.load %arg2[%c96, %c0_44] : memref<288x64xbf16, #tpu.memory_space<vmem>>, vector<32x64xbf16>
    %cst_45 = arith.constant dense<0.000000e+00> : vector<64x64xf32>
    %25 = tpu.matmul %23, %24, %cst_45 {dimension_numbers = #tpu.dot_dimension_numbers<[1], [0], [0], [1], [0, 0, 1, 1], [], []>} : vector<64x32xbf16>, vector<32x64xbf16>, vector<64x64xf32> -> vector<64x64xf32>
    %26 = arith.addf %21, %25 : vector<64x64xf32>
    %c0_46 = arith.constant 0 : index
    %c1_47 = arith.constant 1 : index
    %c1_48 = arith.constant 1 : index
    %c0_49 = arith.constant 0 : index
    %27 = vector.load %arg11[%c0_46, %c1_47, %c1_48, %c0_49] : memref<1x10x10x32xbf16, #tpu.memory_space<vmem>>, vector<1x8x8x32xbf16>
    %28 = vector.shape_cast %27 : vector<1x8x8x32xbf16> to vector<64x32xbf16>
    %c128 = arith.constant 128 : index
    %c0_50 = arith.constant 0 : index
    %29 = vector.load %arg2[%c128, %c0_50] : memref<288x64xbf16, #tpu.memory_space<vmem>>, vector<32x64xbf16>
    %cst_51 = arith.constant dense<0.000000e+00> : vector<64x64xf32>
    %30 = tpu.matmul %28, %29, %cst_51 {dimension_numbers = #tpu.dot_dimension_numbers<[1], [0], [0], [1], [0, 0, 1, 1], [], []>} : vector<64x32xbf16>, vector<32x64xbf16>, vector<64x64xf32> -> vector<64x64xf32>
    %31 = arith.addf %26, %30 : vector<64x64xf32>
    %c0_52 = arith.constant 0 : index
    %c1_53 = arith.constant 1 : index
    %c2_54 = arith.constant 2 : index
    %c0_55 = arith.constant 0 : index
    %32 = vector.load %arg11[%c0_52, %c1_53, %c2_54, %c0_55] : memref<1x10x10x32xbf16, #tpu.memory_space<vmem>>, vector<1x8x8x32xbf16>
    %33 = vector.shape_cast %32 : vector<1x8x8x32xbf16> to vector<64x32xbf16>
    %c160 = arith.constant 160 : index
    %c0_56 = arith.constant 0 : index
    %34 = vector.load %arg2[%c160, %c0_56] : memref<288x64xbf16, #tpu.memory_space<vmem>>, vector<32x64xbf16>
    %cst_57 = arith.constant dense<0.000000e+00> : vector<64x64xf32>
    %35 = tpu.matmul %33, %34, %cst_57 {dimension_numbers = #tpu.dot_dimension_numbers<[1], [0], [0], [1], [0, 0, 1, 1], [], []>} : vector<64x32xbf16>, vector<32x64xbf16>, vector<64x64xf32> -> vector<64x64xf32>
    %36 = arith.addf %31, %35 : vector<64x64xf32>
    %c0_58 = arith.constant 0 : index
    %c2_59 = arith.constant 2 : index
    %c0_60 = arith.constant 0 : index
    %c0_61 = arith.constant 0 : index
    %37 = vector.load %arg11[%c0_58, %c2_59, %c0_60, %c0_61] : memref<1x10x10x32xbf16, #tpu.memory_space<vmem>>, vector<1x8x8x32xbf16>
    %38 = vector.shape_cast %37 : vector<1x8x8x32xbf16> to vector<64x32xbf16>
    %c192 = arith.constant 192 : index
    %c0_62 = arith.constant 0 : index
    %39 = vector.load %arg2[%c192, %c0_62] : memref<288x64xbf16, #tpu.memory_space<vmem>>, vector<32x64xbf16>
    %cst_63 = arith.constant dense<0.000000e+00> : vector<64x64xf32>
    %40 = tpu.matmul %38, %39, %cst_63 {dimension_numbers = #tpu.dot_dimension_numbers<[1], [0], [0], [1], [0, 0, 1, 1], [], []>} : vector<64x32xbf16>, vector<32x64xbf16>, vector<64x64xf32> -> vector<64x64xf32>
    %41 = arith.addf %36, %40 : vector<64x64xf32>
    %c0_64 = arith.constant 0 : index
    %c2_65 = arith.constant 2 : index
    %c1_66 = arith.constant 1 : index
    %c0_67 = arith.constant 0 : index
    %42 = vector.load %arg11[%c0_64, %c2_65, %c1_66, %c0_67] : memref<1x10x10x32xbf16, #tpu.memory_space<vmem>>, vector<1x8x8x32xbf16>
    %43 = vector.shape_cast %42 : vector<1x8x8x32xbf16> to vector<64x32xbf16>
    %c224 = arith.constant 224 : index
    %c0_68 = arith.constant 0 : index
    %44 = vector.load %arg2[%c224, %c0_68] : memref<288x64xbf16, #tpu.memory_space<vmem>>, vector<32x64xbf16>
    %cst_69 = arith.constant dense<0.000000e+00> : vector<64x64xf32>
    %45 = tpu.matmul %43, %44, %cst_69 {dimension_numbers = #tpu.dot_dimension_numbers<[1], [0], [0], [1], [0, 0, 1, 1], [], []>} : vector<64x32xbf16>, vector<32x64xbf16>, vector<64x64xf32> -> vector<64x64xf32>
    %46 = arith.addf %41, %45 : vector<64x64xf32>
    %c0_70 = arith.constant 0 : index
    %c2_71 = arith.constant 2 : index
    %c2_72 = arith.constant 2 : index
    %c0_73 = arith.constant 0 : index
    %47 = vector.load %arg11[%c0_70, %c2_71, %c2_72, %c0_73] : memref<1x10x10x32xbf16, #tpu.memory_space<vmem>>, vector<1x8x8x32xbf16>
    %48 = vector.shape_cast %47 : vector<1x8x8x32xbf16> to vector<64x32xbf16>
    %c256 = arith.constant 256 : index
    %c0_74 = arith.constant 0 : index
    %49 = vector.load %arg2[%c256, %c0_74] : memref<288x64xbf16, #tpu.memory_space<vmem>>, vector<32x64xbf16>
    %cst_75 = arith.constant dense<0.000000e+00> : vector<64x64xf32>
    %50 = tpu.matmul %48, %49, %cst_75 {dimension_numbers = #tpu.dot_dimension_numbers<[1], [0], [0], [1], [0, 0, 1, 1], [], []>} : vector<64x32xbf16>, vector<32x64xbf16>, vector<64x64xf32> -> vector<64x64xf32>
    %51 = arith.addf %46, %50 : vector<64x64xf32>
    %c0_76 = arith.constant 0 : index
    %c0_77 = arith.constant 0 : index
    %52 = vector.load %arg3[%c0_76, %c0_77] : memref<1x64xf32, #tpu.memory_space<vmem>>, vector<1x64xf32>
    %53 = vector.shape_cast %52 : vector<1x64xf32> to vector<64xf32>
    %54 = vector.shape_cast %53 : vector<64xf32> to vector<1x64xf32>
    %55 = vector.broadcast %54 : vector<1x64xf32> to vector<64x64xf32>
    %56 = arith.mulf %51, %55 : vector<64x64xf32>
    %c0_78 = arith.constant 0 : index
    %c0_79 = arith.constant 0 : index
    %57 = vector.load %arg4[%c0_78, %c0_79] : memref<1x64xf32, #tpu.memory_space<vmem>>, vector<1x64xf32>
    %58 = vector.shape_cast %57 : vector<1x64xf32> to vector<64xf32>
    %59 = vector.shape_cast %58 : vector<64xf32> to vector<1x64xf32>
    %60 = vector.broadcast %59 : vector<1x64xf32> to vector<64x64xf32>
    %61 = arith.addf %56, %60 : vector<64x64xf32>
    %cst_80 = arith.constant 0.000000e+00 : f32
    %62 = vector.broadcast %cst_80 : f32 to vector<64x64xf32>
    %63 = arith.maximumf %61, %62 : vector<64x64xf32>
    %64 = vector.shape_cast %63 : vector<64x64xf32> to vector<4x2x8x64xf32>
    %cst_81 = arith.constant dense<0xFF800000> : vector<4x8x64xf32>
    %65 = vector.multi_reduction <maximumf>, %64, %cst_81 [1] : vector<4x2x8x64xf32> to vector<4x8x64xf32>
    %66 = vector.shape_cast %65 : vector<4x8x64xf32> to vector<4x4x2x64xf32>
    %cst_82 = arith.constant dense<0xFF800000> : vector<4x4x64xf32>
    %67 = vector.multi_reduction <maximumf>, %66, %cst_82 [2] : vector<4x4x2x64xf32> to vector<4x4x64xf32>
    %68 = vector.shape_cast %67 : vector<4x4x64xf32> to vector<1x4x4x64xf32>
    %cst_83 = arith.constant 0.000000e+00 : bf16
    %69 = vector.broadcast %cst_83 : bf16 to vector<1x1x6x64xbf16>
    %c0_84 = arith.constant 0 : index
    %c0_85 = arith.constant 0 : index
    %c0_86 = arith.constant 0 : index
    %c0_87 = arith.constant 0 : index
    %70 = vector.load %arg12[%c0_84, %c0_85, %c0_86, %c0_87] : memref<1x6x6x64xbf16, #tpu.memory_space<vmem>>, vector<1x1x6x64xbf16>
    tpu.vector_store %arg12[%c0_84, %c0_85, %c0_86, %c0_87], %69 {strides = array<i32>} : memref<1x6x6x64xbf16, #tpu.memory_space<vmem>>, vector<1x1x6x64xbf16>,
    %c0_88 = arith.constant 0 : index
    %c5 = arith.constant 5 : index
    %c0_89 = arith.constant 0 : index
    %c0_90 = arith.constant 0 : index
    %71 = vector.load %arg12[%c0_88, %c5, %c0_89, %c0_90] : memref<1x6x6x64xbf16, #tpu.memory_space<vmem>>, vector<1x1x6x64xbf16>
    tpu.vector_store %arg12[%c0_88, %c5, %c0_89, %c0_90], %69 {strides = array<i32>} : memref<1x6x6x64xbf16, #tpu.memory_space<vmem>>, vector<1x1x6x64xbf16>,
    %cst_91 = arith.constant 0.000000e+00 : bf16
    %72 = vector.broadcast %cst_91 : bf16 to vector<1x4x1x64xbf16>
    %c0_92 = arith.constant 0 : index
    %c1_93 = arith.constant 1 : index
    %c0_94 = arith.constant 0 : index
    %c0_95 = arith.constant 0 : index
    %73 = vector.load %arg12[%c0_92, %c1_93, %c0_94, %c0_95] : memref<1x6x6x64xbf16, #tpu.memory_space<vmem>>, vector<1x4x1x64xbf16>
    tpu.vector_store %arg12[%c0_92, %c1_93, %c0_94, %c0_95], %72 {strides = array<i32>} : memref<1x6x6x64xbf16, #tpu.memory_space<vmem>>, vector<1x4x1x64xbf16>,
    %c0_96 = arith.constant 0 : index
    %c1_97 = arith.constant 1 : index
    %c5_98 = arith.constant 5 : index
    %c0_99 = arith.constant 0 : index
    %74 = vector.load %arg12[%c0_96, %c1_97, %c5_98, %c0_99] : memref<1x6x6x64xbf16, #tpu.memory_space<vmem>>, vector<1x4x1x64xbf16>
    tpu.vector_store %arg12[%c0_96, %c1_97, %c5_98, %c0_99], %72 {strides = array<i32>} : memref<1x6x6x64xbf16, #tpu.memory_space<vmem>>, vector<1x4x1x64xbf16>,
    %75 = arith.truncf %68 : vector<1x4x4x64xf32> to vector<1x4x4x64xbf16>
    %c0_100 = arith.constant 0 : index
    %c1_101 = arith.constant 1 : index
    %c1_102 = arith.constant 1 : index
    %c0_103 = arith.constant 0 : index
    %76 = vector.load %arg12[%c0_100, %c1_101, %c1_102, %c0_103] : memref<1x6x6x64xbf16, #tpu.memory_space<vmem>>, vector<1x4x4x64xbf16>
    tpu.vector_store %arg12[%c0_100, %c1_101, %c1_102, %c0_103], %75 {strides = array<i32>} : memref<1x6x6x64xbf16, #tpu.memory_space<vmem>>, vector<1x4x4x64xbf16>,
    %c0_104 = arith.constant 0 : index
    %c0_105 = arith.constant 0 : index
    %c0_106 = arith.constant 0 : index
    %c0_107 = arith.constant 0 : index
    %77 = vector.load %arg12[%c0_104, %c0_105, %c0_106, %c0_107] : memref<1x6x6x64xbf16, #tpu.memory_space<vmem>>, vector<1x4x4x64xbf16>
    %78 = vector.shape_cast %77 : vector<1x4x4x64xbf16> to vector<16x64xbf16>
    %c0_108 = arith.constant 0 : index
    %c0_109 = arith.constant 0 : index
    %79 = vector.load %arg5[%c0_108, %c0_109] : memref<576x128xbf16, #tpu.memory_space<vmem>>, vector<64x128xbf16>
    %cst_110 = arith.constant dense<0.000000e+00> : vector<16x128xf32>
    %80 = tpu.matmul %78, %79, %cst_110 {dimension_numbers = #tpu.dot_dimension_numbers<[1], [0], [0], [1], [0, 0, 1, 1], [], []>} : vector<16x64xbf16>, vector<64x128xbf16>, vector<16x128xf32> -> vector<16x128xf32>
    %c0_111 = arith.constant 0 : index
    %c0_112 = arith.constant 0 : index
    %c1_113 = arith.constant 1 : index
    %c0_114 = arith.constant 0 : index
    %81 = vector.load %arg12[%c0_111, %c0_112, %c1_113, %c0_114] : memref<1x6x6x64xbf16, #tpu.memory_space<vmem>>, vector<1x4x4x64xbf16>
    %82 = vector.shape_cast %81 : vector<1x4x4x64xbf16> to vector<16x64xbf16>
    %c64_115 = arith.constant 64 : index
    %c0_116 = arith.constant 0 : index
    %83 = vector.load %arg5[%c64_115, %c0_116] : memref<576x128xbf16, #tpu.memory_space<vmem>>, vector<64x128xbf16>
    %cst_117 = arith.constant dense<0.000000e+00> : vector<16x128xf32>
    %84 = tpu.matmul %82, %83, %cst_117 {dimension_numbers = #tpu.dot_dimension_numbers<[1], [0], [0], [1], [0, 0, 1, 1], [], []>} : vector<16x64xbf16>, vector<64x128xbf16>, vector<16x128xf32> -> vector<16x128xf32>
    %85 = arith.addf %80, %84 : vector<16x128xf32>
    %c0_118 = arith.constant 0 : index
    %c0_119 = arith.constant 0 : index
    %c2_120 = arith.constant 2 : index
    %c0_121 = arith.constant 0 : index
    %86 = vector.load %arg12[%c0_118, %c0_119, %c2_120, %c0_121] : memref<1x6x6x64xbf16, #tpu.memory_space<vmem>>, vector<1x4x4x64xbf16>
    %87 = vector.shape_cast %86 : vector<1x4x4x64xbf16> to vector<16x64xbf16>
    %c128_122 = arith.constant 128 : index
    %c0_123 = arith.constant 0 : index
    %88 = vector.load %arg5[%c128_122, %c0_123] : memref<576x128xbf16, #tpu.memory_space<vmem>>, vector<64x128xbf16>
    %cst_124 = arith.constant dense<0.000000e+00> : vector<16x128xf32>
    %89 = tpu.matmul %87, %88, %cst_124 {dimension_numbers = #tpu.dot_dimension_numbers<[1], [0], [0], [1], [0, 0, 1, 1], [], []>} : vector<16x64xbf16>, vector<64x128xbf16>, vector<16x128xf32> -> vector<16x128xf32>
    %90 = arith.addf %85, %89 : vector<16x128xf32>
    %c0_125 = arith.constant 0 : index
    %c1_126 = arith.constant 1 : index
    %c0_127 = arith.constant 0 : index
    %c0_128 = arith.constant 0 : index
    %91 = vector.load %arg12[%c0_125, %c1_126, %c0_127, %c0_128] : memref<1x6x6x64xbf16, #tpu.memory_space<vmem>>, vector<1x4x4x64xbf16>
    %92 = vector.shape_cast %91 : vector<1x4x4x64xbf16> to vector<16x64xbf16>
    %c192_129 = arith.constant 192 : index
    %c0_130 = arith.constant 0 : index
    %93 = vector.load %arg5[%c192_129, %c0_130] : memref<576x128xbf16, #tpu.memory_space<vmem>>, vector<64x128xbf16>
    %cst_131 = arith.constant dense<0.000000e+00> : vector<16x128xf32>
    %94 = tpu.matmul %92, %93, %cst_131 {dimension_numbers = #tpu.dot_dimension_numbers<[1], [0], [0], [1], [0, 0, 1, 1], [], []>} : vector<16x64xbf16>, vector<64x128xbf16>, vector<16x128xf32> -> vector<16x128xf32>
    %95 = arith.addf %90, %94 : vector<16x128xf32>
    %c0_132 = arith.constant 0 : index
    %c1_133 = arith.constant 1 : index
    %c1_134 = arith.constant 1 : index
    %c0_135 = arith.constant 0 : index
    %96 = vector.load %arg12[%c0_132, %c1_133, %c1_134, %c0_135] : memref<1x6x6x64xbf16, #tpu.memory_space<vmem>>, vector<1x4x4x64xbf16>
    %97 = vector.shape_cast %96 : vector<1x4x4x64xbf16> to vector<16x64xbf16>
    %c256_136 = arith.constant 256 : index
    %c0_137 = arith.constant 0 : index
    %98 = vector.load %arg5[%c256_136, %c0_137] : memref<576x128xbf16, #tpu.memory_space<vmem>>, vector<64x128xbf16>
    %cst_138 = arith.constant dense<0.000000e+00> : vector<16x128xf32>
    %99 = tpu.matmul %97, %98, %cst_138 {dimension_numbers = #tpu.dot_dimension_numbers<[1], [0], [0], [1], [0, 0, 1, 1], [], []>} : vector<16x64xbf16>, vector<64x128xbf16>, vector<16x128xf32> -> vector<16x128xf32>
    %100 = arith.addf %95, %99 : vector<16x128xf32>
    %c0_139 = arith.constant 0 : index
    %c1_140 = arith.constant 1 : index
    %c2_141 = arith.constant 2 : index
    %c0_142 = arith.constant 0 : index
    %101 = vector.load %arg12[%c0_139, %c1_140, %c2_141, %c0_142] : memref<1x6x6x64xbf16, #tpu.memory_space<vmem>>, vector<1x4x4x64xbf16>
    %102 = vector.shape_cast %101 : vector<1x4x4x64xbf16> to vector<16x64xbf16>
    %c320 = arith.constant 320 : index
    %c0_143 = arith.constant 0 : index
    %103 = vector.load %arg5[%c320, %c0_143] : memref<576x128xbf16, #tpu.memory_space<vmem>>, vector<64x128xbf16>
    %cst_144 = arith.constant dense<0.000000e+00> : vector<16x128xf32>
    %104 = tpu.matmul %102, %103, %cst_144 {dimension_numbers = #tpu.dot_dimension_numbers<[1], [0], [0], [1], [0, 0, 1, 1], [], []>} : vector<16x64xbf16>, vector<64x128xbf16>, vector<16x128xf32> -> vector<16x128xf32>
    %105 = arith.addf %100, %104 : vector<16x128xf32>
    %c0_145 = arith.constant 0 : index
    %c2_146 = arith.constant 2 : index
    %c0_147 = arith.constant 0 : index
    %c0_148 = arith.constant 0 : index
    %106 = vector.load %arg12[%c0_145, %c2_146, %c0_147, %c0_148] : memref<1x6x6x64xbf16, #tpu.memory_space<vmem>>, vector<1x4x4x64xbf16>
    %107 = vector.shape_cast %106 : vector<1x4x4x64xbf16> to vector<16x64xbf16>
    %c384 = arith.constant 384 : index
    %c0_149 = arith.constant 0 : index
    %108 = vector.load %arg5[%c384, %c0_149] : memref<576x128xbf16, #tpu.memory_space<vmem>>, vector<64x128xbf16>
    %cst_150 = arith.constant dense<0.000000e+00> : vector<16x128xf32>
    %109 = tpu.matmul %107, %108, %cst_150 {dimension_numbers = #tpu.dot_dimension_numbers<[1], [0], [0], [1], [0, 0, 1, 1], [], []>} : vector<16x64xbf16>, vector<64x128xbf16>, vector<16x128xf32> -> vector<16x128xf32>
    %110 = arith.addf %105, %109 : vector<16x128xf32>
    %c0_151 = arith.constant 0 : index
    %c2_152 = arith.constant 2 : index
    %c1_153 = arith.constant 1 : index
    %c0_154 = arith.constant 0 : index
    %111 = vector.load %arg12[%c0_151, %c2_152, %c1_153, %c0_154] : memref<1x6x6x64xbf16, #tpu.memory_space<vmem>>, vector<1x4x4x64xbf16>
    %112 = vector.shape_cast %111 : vector<1x4x4x64xbf16> to vector<16x64xbf16>
    %c448 = arith.constant 448 : index
    %c0_155 = arith.constant 0 : index
    %113 = vector.load %arg5[%c448, %c0_155] : memref<576x128xbf16, #tpu.memory_space<vmem>>, vector<64x128xbf16>
    %cst_156 = arith.constant dense<0.000000e+00> : vector<16x128xf32>
    %114 = tpu.matmul %112, %113, %cst_156 {dimension_numbers = #tpu.dot_dimension_numbers<[1], [0], [0], [1], [0, 0, 1, 1], [], []>} : vector<16x64xbf16>, vector<64x128xbf16>, vector<16x128xf32> -> vector<16x128xf32>
    %115 = arith.addf %110, %114 : vector<16x128xf32>
    %c0_157 = arith.constant 0 : index
    %c2_158 = arith.constant 2 : index
    %c2_159 = arith.constant 2 : index
    %c0_160 = arith.constant 0 : index
    %116 = vector.load %arg12[%c0_157, %c2_158, %c2_159, %c0_160] : memref<1x6x6x64xbf16, #tpu.memory_space<vmem>>, vector<1x4x4x64xbf16>
    %117 = vector.shape_cast %116 : vector<1x4x4x64xbf16> to vector<16x64xbf16>
    %c512 = arith.constant 512 : index
    %c0_161 = arith.constant 0 : index
    %118 = vector.load %arg5[%c512, %c0_161] : memref<576x128xbf16, #tpu.memory_space<vmem>>, vector<64x128xbf16>
    %cst_162 = arith.constant dense<0.000000e+00> : vector<16x128xf32>
    %119 = tpu.matmul %117, %118, %cst_162 {dimension_numbers = #tpu.dot_dimension_numbers<[1], [0], [0], [1], [0, 0, 1, 1], [], []>} : vector<16x64xbf16>, vector<64x128xbf16>, vector<16x128xf32> -> vector<16x128xf32>
    %120 = arith.addf %115, %119 : vector<16x128xf32>
    %c0_163 = arith.constant 0 : index
    %c0_164 = arith.constant 0 : index
    %121 = vector.load %arg6[%c0_163, %c0_164] : memref<1x128xf32, #tpu.memory_space<vmem>>, vector<1x128xf32>
    %122 = vector.shape_cast %121 : vector<1x128xf32> to vector<128xf32>
    %123 = vector.shape_cast %122 : vector<128xf32> to vector<1x128xf32>
    %124 = vector.broadcast %123 : vector<1x128xf32> to vector<16x128xf32>
    %125 = arith.mulf %120, %124 : vector<16x128xf32>
    %c0_165 = arith.constant 0 : index
    %c0_166 = arith.constant 0 : index
    %126 = vector.load %arg7[%c0_165, %c0_166] : memref<1x128xf32, #tpu.memory_space<vmem>>, vector<1x128xf32>
    %127 = vector.shape_cast %126 : vector<1x128xf32> to vector<128xf32>
    %128 = vector.shape_cast %127 : vector<128xf32> to vector<1x128xf32>
    %129 = vector.broadcast %128 : vector<1x128xf32> to vector<16x128xf32>
    %130 = arith.addf %125, %129 : vector<16x128xf32>
    %cst_167 = arith.constant 0.000000e+00 : f32
    %131 = vector.broadcast %cst_167 : f32 to vector<16x128xf32>
    %132 = arith.maximumf %130, %131 : vector<16x128xf32>
    %133 = vector.shape_cast %132 : vector<16x128xf32> to vector<1x16x128xf32>
    %cst_168 = arith.constant dense<0.000000e+00> : vector<1x128xf32>
    %134 = vector.multi_reduction <add>, %133, %cst_168 [1] : vector<1x16x128xf32> to vector<1x128xf32>
    %135 = arith.truncf %134 : vector<1x128xf32> to vector<1x128xbf16>
    %c0_169 = arith.constant 0 : index
    %c0_170 = arith.constant 0 : index
    %136 = vector.load %arg8[%c0_169, %c0_170] : memref<128x10xbf16, #tpu.memory_space<vmem>>, vector<128x10xbf16>
    %cst_171 = arith.constant dense<0.000000e+00> : vector<1x10xf32>
    %137 = tpu.matmul %135, %136, %cst_171 {dimension_numbers = #tpu.dot_dimension_numbers<[1], [0], [0], [1], [0, 0, 1, 1], [], []>} : vector<1x128xbf16>, vector<128x10xbf16>, vector<1x10xf32> -> vector<1x10xf32>
    %c0_172 = arith.constant 0 : index
    %c0_173 = arith.constant 0 : index
    %138 = vector.load %arg9[%c0_172, %c0_173] : memref<1x10xf32, #tpu.memory_space<vmem>>, vector<1x10xf32>
    %139 = arith.addf %137, %138 : vector<1x10xf32>
    %140 = vector.shape_cast %139 : vector<1x10xf32> to vector<1x1x10xf32>
    %c0_174 = arith.constant 0 : index
    %c0_175 = arith.constant 0 : index
    %c0_176 = arith.constant 0 : index
    %141 = vector.load %arg10[%c0_174, %c0_175, %c0_176] : memref<1x1x10xf32, #tpu.memory_space<vmem>>, vector<1x1x10xf32>
    tpu.vector_store %arg10[%c0_174, %c0_175, %c0_176], %140 {strides = array<i32>} : memref<1x1x10xf32, #tpu.memory_space<vmem>>, vector<1x1x10xf32>,
    return
  }
  func.func @transform_0(%arg0: i32) -> (i32, i32, i32, i32) {
    %c0_i32 = arith.constant 0 : i32
    %c0_i32_0 = arith.constant 0 : i32
    %c0_i32_1 = arith.constant 0 : i32
    %c0_i32_2 = arith.constant 0 : i32
    return %arg0, %c0_i32, %c0_i32_0, %c0_i32_1 : i32, i32, i32, i32
  }
  func.func @transform_1(%arg0: i32) -> (i32, i32) {
    %c0_i32 = arith.constant 0 : i32
    %c0_i32_0 = arith.constant 0 : i32
    %c0_i32_1 = arith.constant 0 : i32
    return %c0_i32, %c0_i32_0 : i32, i32
  }
  func.func @transform_2(%arg0: i32) -> (i32, i32) {
    %c0_i32 = arith.constant 0 : i32
    %c0_i32_0 = arith.constant 0 : i32
    %c0_i32_1 = arith.constant 0 : i32
    return %c0_i32, %c0_i32_0 : i32, i32
  }
  func.func @transform_3(%arg0: i32) -> (i32, i32) {
    %c0_i32 = arith.constant 0 : i32
    %c0_i32_0 = arith.constant 0 : i32
    %c0_i32_1 = arith.constant 0 : i32
    return %c0_i32, %c0_i32_0 : i32, i32
  }
  func.func @transform_4(%arg0: i32) -> (i32, i32) {
    %c0_i32 = arith.constant 0 : i32
    %c0_i32_0 = arith.constant 0 : i32
    %c0_i32_1 = arith.constant 0 : i32
    return %c0_i32, %c0_i32_0 : i32, i32
  }
  func.func @transform_5(%arg0: i32) -> (i32, i32) {
    %c0_i32 = arith.constant 0 : i32
    %c0_i32_0 = arith.constant 0 : i32
    %c0_i32_1 = arith.constant 0 : i32
    return %c0_i32, %c0_i32_0 : i32, i32
  }
  func.func @transform_6(%arg0: i32) -> (i32, i32) {
    %c0_i32 = arith.constant 0 : i32
    %c0_i32_0 = arith.constant 0 : i32
    %c0_i32_1 = arith.constant 0 : i32
    return %c0_i32, %c0_i32_0 : i32, i32
  }
  func.func @transform_7(%arg0: i32) -> (i32, i32) {
    %c0_i32 = arith.constant 0 : i32
    %c0_i32_0 = arith.constant 0 : i32
    %c0_i32_1 = arith.constant 0 : i32
    return %c0_i32, %c0_i32_0 : i32, i32
  }
  func.func @transform_8(%arg0: i32) -> (i32, i32) {
    %c0_i32 = arith.constant 0 : i32
    %c0_i32_0 = arith.constant 0 : i32
    %c0_i32_1 = arith.constant 0 : i32
    return %c0_i32, %c0_i32_0 : i32, i32
  }
  func.func @transform_9(%arg0: i32) -> (i32, i32, i32) {
    %c0_i32 = arith.constant 0 : i32
    %c0_i32_0 = arith.constant 0 : i32
    %c0_i32_1 = arith.constant 0 : i32
    return %arg0, %c0_i32, %c0_i32_0 : i32, i32, i32
  }
}

</mosaic_0001>

<bundles_post_ra>
// kernel: animaux_cnn_forward.1
= control target key start
LH: loop header
LB: loop body
LE: loop exit
PB: predicated region body
PF: predicated region fallthrough
CT: control target
= control target key end

     0   :  { %14 = vsyncpa [#allocation5], 0  ;;  %s5941_s0 = inlined_call_operand.vmem [shape: bf16[2,8,8,32], index: 0, kind: input, shape index: {}]   ;;  %s5942_s1 = inlined_call_operand.vmem [shape: bf16[288,64], index: 1, kind: input, shape index: {}]   ;;  %s5943_s2 = inlined_call_operand.vmem [shape: f32[1,64], index: 2, kind: input, shape index: {}]   ;;  %s5944_s3 = inlined_call_operand.vmem [shape: f32[1,64], index: 3, kind: input, shape index: {}]   ;;  %s5945_s4 = inlined_call_operand.vmem [shape: bf16[576,128], index: 4, kind: input, shape index: {}]   ;;  %s5946_s5 = inlined_call_operand.vmem [shape: f32[1,128], index: 5, kind: input, shape index: {}]   ;;  %s5947_s6 = inlined_call_operand.vmem [shape: f32[1,128], index: 6, kind: input, shape index: {}]   ;;  %s5948_s7 = inlined_call_operand.vmem [shape: bf16[128,10], index: 7, kind: input, shape index: {}]   ;;  %s5949_s8 = inlined_call_operand.vmem [shape: f32[1,10], index: 8, kind: input, shape index: {}]   ;;  %s5950_s9 = inlined_call_operand.hbm [shape: f32[2,1,10], index: 9, kind: output, shape index: {}]  }
   0x1   :  { %16 = vsyncpa [#allocation5 + $0x1], 0  ;;  %s4922_s30 = smov 0   ;;  %s4924_s10 = smov 0  }
   0x2   :  { %s4926_s11 = smov 0   ;;  %s4928_s12 = smov 0  }
   0x3 LB: > { %s4943_s13 = sadd.s32 4294967295, %s4865_s12   ;;  %s4084_s14 = sadd.s32 4294967294, %s4865_s12   ;;  %s4865_s12 = sphi %s4928_s12, %s5976_s12   ;;  %s4861_s11 = sphi %s4926_s11, %s5975_s11   ;;  %s4857_s10 = sphi %s4924_s10, %s5974_s10   ;;  %s4853_s30 = sphi %s4922_s30, %s5973_s30  }
   0x4   : > { %s4947_s15 = sadd.s32 1, %s4865_s12   ;;  %s223_s16 = sadd.s32 1, %s4861_s11 }
   0x5   : > { %s220_s17 = ssub.s32 %s4865_s12, %s4947_s15  ;;  %p233_p0 = scmp.ne.s32.totalorder %s4861_s11, %s4857_s10 }
   0x6   : > { %p221_p1 = scmp.eq.s32.totalorder %s220_s17, 0  ;;  %p234_p2 = scmp.eq.s32.totalorder %s4943_s13, 1 }
   0x7   : > { %p239_p3 = scmp.ne.s32.totalorder %s4857_s10, %s4853_s30  ;;  %p240_p4 = scmp.eq.s32.totalorder %s4084_s14, 1 }
   0x8   : > { %s4958_s18 = scalar_select %p221_p1, %s4861_s11, %s223_s16  }
   0x9   : > { %p4960_p5 = por %p234_p2, %p233_p0  ;;  %p4964_p6 = por %p240_p4, %p239_p3 }
   0xa   : > { %p4087_p7 = scmp.ge.s32.totalorder %s4865_s12, 1  ;;  %p290_p8 = scmp.lt.s32.totalorder %s4865_s12, 3 }
   0xc   : > { %p291_p9 = pnand %p4087_p7, %p290_p8 }
   0xd   : > { %p325_p10 = scmp.lt.s32.totalorder (!%p291_p9), %s4943_s13, 1  ;;  %s323_s27 = sand.u32 (!%p291_p9), 1, %s4857_s10  }
   0xe   : > { %294 = sbr.rel (%p291_p9) target bundleno = 928 (0x3a0), region = 56  ;;  %s4313_s16 = sshll.u32 (!%p291_p9), %s4943_s13, 4 }
   0xf   : > { %s5900_s23 = scalar_lea.hbm (!%p291_p9), %s5950_s9, %s4313_s16  ;;  %s4017_s24 = scalar_lea.sflag (!%p291_p9), [#allocation5], %s323_s27 }
  0x13   : > { %v4720_v0 = vld [vmem:[%s5942_s1 + $0x18] sm:$0xff]   ;;  %v4721_v1 = vld [vmem:[%s5942_s1 + $0x10] sm:$0xff]   ;;  %s326_s25 = scalar_select %p325_p10, %s4943_s13, 1  ;;  %vm331_vm0 = vcmask 257024   ;;  %vm333_vm1 = vcmask 253952   ;;  %v4867_v2 = vmov 0  }
  0x14   : > { %4441 = vmatprep.subr.bf16.mxu1 %v4720_v0  ;;  %vm340_vm2 = vsmask.f32 256  ;;  %332 = vst.msk [vmem:[#allocation2] sm:$0xf] %vm331_vm0, %v4867_v2  ;;  %v342_v4 = vld [vmem:[#allocation2 + $0x8] sm:$0x1] }
  0x15   : > { %4442 = vmatpush3.bf16.msra.mxu1 %v4720_v0  ;;  %334 = vst.msk [vmem:[#allocation2 + $0x4] sm:$0x1] %vm333_vm1, %v4867_v2  ;;  %vm4984_vm3 = vmand %vm333_vm1, %vm340_vm2  ;;  %vm366_vm4 = vsmask.f32 7938  ;;  %v368_v5 = vld [vmem:[#allocation2 + $0xc] sm:$0x1] }
  0x16   : > { %336 = vst.msk [vmem:[#allocation2 + $0x48] sm:$0xf] %vm331_vm0, %v4867_v2  ;;  %4443 = vmatprep.subr.bf16.mxu1 %v4721_v1  ;;  %s4316_s26 = sshll.u32 %s326_s25, 5  ;;  %v343_v6 = vsel %vm4984_vm3, 0, %v342_v4  ;;  %vm4996_vm5 = vmand %vm333_vm1, %vm366_vm4  ;;  %v5011_v10 = vld [vmem:[%s5942_s1 + $0x8] sm:$0xff]   ;;  %v4725_v42 = vld [vmem:[%s5942_s1 + $0x20] sm:$0xff]  }
  0x17   : > { %337 = vst.msk [vmem:[#allocation2 + $0x4c] sm:$0x1] %vm333_vm1, %v4867_v2  ;;  %s5003_s29 = scalar_lea.vmem %s5941_s0, %s4316_s26  ;;  %344 = vst [vmem:[#allocation2 + $0x8] sm:$0x1] %v343_v6  ;;  %v369_v8 = vsel %vm4996_vm5, 0, %v368_v5  ;;  %v4723_v24 = vld [vmem:[%s5942_s1 + $0x28] sm:$0xff]  }
  0x18   : > { %370 = vst [vmem:[#allocation2 + $0xc] sm:$0x1] %v369_v8  ;;  %v392_v9 = vld [vmem:[%s5003_s29] sm:$0xf]  ;;  %v345_v13 = vld [vmem:[#allocation2 + $0x10] sm:$0x1]  ;;  %vm5020_vm6 = vmand %vm331_vm0, %vm366_vm4  ;;  %4465 = vmatprep.subr.bf16.mxu0 %v4723_v24 }
  0x19   : > { %4444 = vmatpush3.bf16.msra.mxu1 %v4721_v1  ;;  %v401_v11 = vshrl.u32 %v392_v9, 16  ;;  %v404_v12 = vshll.u32 %v392_v9, 16  ;;  %v348_v14 = vld [vmem:[#allocation2 + $0x18] sm:$0x1]  ;;  %v346_v15 = vsel %vm4984_vm3, 0, %v345_v13  ;;  %4466 = vmatpush3.bf16.msra.mxu0 %v4723_v24  ;;  %vm693_vm10 = vcmask 261120  }
  0x1a   : > { %4453 = vmatprep.subr.bf16.mxu1 %v5011_v10  ;;  %v349_v16 = vsel %vm4984_vm3, 0, %v348_v14  ;;  %v371_v17 = vld [vmem:[#allocation2 + $0x14] sm:$0x1]  ;;  %v374_v18 = vld [vmem:[#allocation2 + $0x1c] sm:$0x1]  ;;  %4467 = vmatprep.subr.bf16.mxu0 %v4725_v42  ;;  %vm904_vm11 = vcmask 1042432  }
  0x1b   : > { %v403_v19 = vrot.slane %v401_v11, 7  ;;  %347 = vst [vmem:[#allocation2 + $0x10] sm:$0x1] %v346_v15  ;;  %350 = vst [vmem:[#allocation2 + $0x18] sm:$0x1] %v349_v16  ;;  %v372_v21 = vsel %vm4996_vm5, 0, %v371_v17 }
  0x1c   : > { %v375_v22 = vsel %vm4996_vm5, 0, %v374_v18  ;;  %v393_v23 = vld [vmem:[%s5003_s29 + $0x4] sm:$0xf]  ;;  %v5032_v25 = vld [vmem:[#allocation2] sm:$0xf]  ;;  %v5072_v11 = vld [vmem:[%s5942_s1 + $0x48] sm:$0xff]  }
  0x1d   : > { %v5034_v26 = vld [vmem:[#allocation2 + $0x4] sm:$0x1]  ;;  %373 = vst [vmem:[#allocation2 + $0x14] sm:$0x1] %v372_v21  ;;  %376 = vst [vmem:[#allocation2 + $0x1c] sm:$0x1] %v375_v22  ;;  %v406_v28 = vor.u32 %v404_v12, %v403_v19  ;;  %4468 = vmatpush3.bf16.msra.mxu0 %v4725_v42 }
  0x1e   : > { %v394_v27 = vld [vmem:[%s5003_s29 + $0x8] sm:$0xf]  ;;  %v407_v29 = vrot.slane %v403_v19, 4  ;;  %v554_v30 = vshrl.u32 %v5032_v25, 16  ;;  %v557_v31 = vshll.u32 %v5032_v25, 16  ;;  %v563_v33 = vshll.u32 %v5034_v26, 16  ;;  %4489 = vmatprep.subr.bf16.mxu0 %v5072_v11 }
  0x1f   : > { %v482_v32 = vld [vmem:[#allocation2 + $0x8] sm:$0xf]  ;;  %vm550_vm7 = vsmask.f32 3328  ;;  %vm551_vm8 = vsmask.f32 7440 }
  0x20   : > { %v409_v34 = vshrl.u32 %v393_v23, 16  ;;  %v412_v35 = vshll.u32 %v393_v23, 16  ;;  %v417_v36 = vshrl.u32 %v394_v27, 16  ;;  %v483_v37 = vsel %vm5020_vm6, %v406_v28, %v482_v32  ;;  %v485_v38 = vld [vmem:[#allocation2 + $0xc] sm:$0x1]  ;;  %vm5083_vm9 = vmor %vm550_vm7, %vm551_vm8  ;;  %s4871_s25 = smov [#allocation4]  }
  0x21   : > { %v556_v39 = vrot.slane %v554_v30, 4  ;;  %v559_v40 = vrot.slane %v557_v31, 5  ;;  %v420_v41 = vshll.u32 %v394_v27, 16  ;;  %484 = vst [vmem:[#allocation2 + $0x8] sm:$0xf] %v483_v37  ;;  %v486_v43 = vsel %vm4984_vm3, %v407_v29, %v485_v38  ;;  %v5276_v7 = vld [vmem:[%s5942_s1 + $0x88] sm:$0xff]  }
  0x22   : > { %v5047_v44 = vrot.slane %v563_v33, 5  ;;  %v411_v45 = vrot.slane %v409_v34, 7  ;;  %v419_v46 = vrot.slane %v417_v36, 7  ;;  %487 = vst [vmem:[#allocation2 + $0xc] sm:$0x1] %v486_v43  ;;  %vm905_vm12 = vcmask 1046532  }
  0x23   : > { %v560_v47 = vor.u32 %v559_v40, %v556_v39  ;;  %v351_v48 = vld [vmem:[#allocation2 + $0x20] sm:$0x1]  ;;  %v354_v49 = vld [vmem:[#allocation2 + $0x28] sm:$0x1]  ;;  %v377_v50 = vld [vmem:[#allocation2 + $0x24] sm:$0x1] }
  0x24   : > { %v414_v51 = vor.u32 %v412_v35, %v411_v45  ;;  %v415_v52 = vrot.slane %v411_v45, 4  ;;  %v422_v53 = vor.u32 %v420_v41, %v419_v46  ;;  %v423_v54 = vrot.slane %v419_v46, 4  ;;  %v488_v55 = vld [vmem:[#allocation2 + $0x10] sm:$0xf]  ;;  %v494_v56 = vld [vmem:[#allocation2 + $0x18] sm:$0xf]  ;;  %vm5142_vm13 = vmor %vm904_vm11, %vm905_vm12 }
  0x25   : > { %v5049_v57 = vrot.slane %v560_v47, 4  ;;  %v491_v58 = vld [vmem:[#allocation2 + $0x14] sm:$0x1]  ;;  %v497_v59 = vld [vmem:[#allocation2 + $0x1c] sm:$0x1]  ;;  %v352_v60 = vsel %vm4984_vm3, 0, %v351_v48 }
  0x26   : > { %v489_v61 = vsel %vm5020_vm6, %v414_v51, %v488_v55  ;;  %v492_v62 = vsel %vm4984_vm3, %v415_v52, %v491_v58  ;;  %v495_v63 = vsel %vm5020_vm6, %v422_v53, %v494_v56  ;;  %v498_v0 = vsel %vm4984_vm3, %v423_v54, %v497_v59  ;;  %353 = vst [vmem:[#allocation2 + $0x20] sm:$0x1] %v352_v60  ;;  %v380_v1 = vld [vmem:[#allocation2 + $0x2c] sm:$0x1]  ;;  %v396_v5 = vld [vmem:[%s5003_s29 + $0x10] sm:$0xf] }
  0x27   : > { %v395_v4 = vld [vmem:[%s5003_s29 + $0xc] sm:$0xf]  ;;  %490 = vst [vmem:[#allocation2 + $0x10] sm:$0xf] %v489_v61  ;;  %493 = vst [vmem:[#allocation2 + $0x14] sm:$0x1] %v492_v62  ;;  %v566_v41 = vsel %vm5083_vm9, %v5049_v57, %v5047_v44 }
  0x28   : > { %496 = vst [vmem:[#allocation2 + $0x18] sm:$0xf] %v495_v63  ;;  %499 = vst [vmem:[#allocation2 + $0x1c] sm:$0x1] %v498_v0  ;;  %v355_v6 = vsel %vm4984_vm3, 0, %v354_v49  ;;  %v378_v8 = vsel %vm4996_vm5, 0, %v377_v50 }
  0x29   : > { %v381_v9 = vsel %vm4996_vm5, 0, %v380_v1  ;;  %356 = vst [vmem:[#allocation2 + $0x28] sm:$0x1] %v355_v6  ;;  %379 = vst [vmem:[#allocation2 + $0x24] sm:$0x1] %v378_v8  ;;  %v425_v12 = vshrl.u32 %v395_v4, 16 }
  0x2a   : > { %382 = vst [vmem:[#allocation2 + $0x2c] sm:$0x1] %v381_v9  ;;  %v428_v13 = vshll.u32 %v395_v4, 16  ;;  %v433_v14 = vshrl.u32 %v396_v5, 16  ;;  %v436_v15 = vshll.u32 %v396_v5, 16  ;;  %vm2388_vm14 = vcmask 516096  }
  0x2b   : > { %v5074_v16 = vld [vmem:[#allocation2 + $0x8] sm:$0xf]  ;;  %v357_v17 = vld [vmem:[#allocation2 + $0x30] sm:$0x1]  ;;  %v360_v18 = vld [vmem:[#allocation2 + $0x38] sm:$0x1] }
  0x2c   : > { %v5077_v19 = vld [vmem:[#allocation2 + $0xc] sm:$0x1]  ;;  %v568_v21 = vshrl.u32 %v5074_v16, 16  ;;  %v571_v22 = vshll.u32 %v5074_v16, 16  ;;  %v427_v23 = vrot.slane %v425_v12, 7  ;;  %v435_v24 = vrot.slane %v433_v14, 7  ;;  %vm5431_vm15 = vmand %vm2388_vm14, %vm340_vm2 }
  0x2d   : > { %v577_v28 = vshll.u32 %v5077_v19, 16  ;;  %v358_v29 = vsel %vm4984_vm3, 0, %v357_v17  ;;  %v361_v30 = vsel %vm4984_vm3, 0, %v360_v18  ;;  %v383_v31 = vld [vmem:[#allocation2 + $0x34] sm:$0x1]  ;;  %vm2383_vm0 = vcmask 518144  }
  0x2e   : > { %v570_v32 = vrot.slane %v568_v21, 4  ;;  %v573_v33 = vrot.slane %v571_v22, 5  ;;  %v430_v34 = vor.u32 %v428_v13, %v427_v23  ;;  %359 = vst [vmem:[#allocation2 + $0x30] sm:$0x1] %v358_v29  ;;  %362 = vst [vmem:[#allocation2 + $0x38] sm:$0x1] %v361_v30  ;;  %v438_v47 = vor.u32 %v436_v15, %v435_v24 }
  0x2f   : > { %v386_v35 = vld [vmem:[#allocation2 + $0x3c] sm:$0x1]  ;;  %v579_v36 = vrot.slane %v577_v28, 5  ;;  %v431_v37 = vrot.slane %v427_v23, 4  ;;  %v439_v38 = vrot.slane %v435_v24, 4  ;;  %v384_v40 = vsel %vm4996_vm5, 0, %v383_v31 }
  0x30   : > { %v500_v39 = vld [vmem:[#allocation2 + $0x20] sm:$0xf]  ;;  %v574_v42 = vor.u32 %v573_v33, %v570_v32  ;;  %v5098_v43 = vld [vmem:[#allocation2 + $0x10] sm:$0xf]  ;;  %v5100_v45 = vld [vmem:[#allocation2 + $0x18] sm:$0xf] }
  0x31   : > { %v5102_v46 = vld [vmem:[#allocation2 + $0x14] sm:$0x1]  ;;  %v501_v48 = vsel %vm5020_vm6, %v430_v34, %v500_v39  ;;  %385 = vst [vmem:[#allocation2 + $0x34] sm:$0x1] %v384_v40  ;;  %v5106_v49 = vld [vmem:[#allocation2 + $0x1c] sm:$0x1] }
  0x32   : > { %v582_v50 = vshrl.u32 %v5098_v43, 16  ;;  %v585_v44 = vshll.u32 %v5098_v43, 16  ;;  %v591_v51 = vshll.u32 %v5102_v46, 16  ;;  %v596_v52 = vshrl.u32 %v5100_v45, 16  ;;  %502 = vst [vmem:[#allocation2 + $0x20] sm:$0xf] %v501_v48 }
  0x33   : > { %v575_v53 = vrot.slane %v574_v42, 4  ;;  %v599_v54 = vshll.u32 %v5100_v45, 16  ;;  %v605_v55 = vshll.u32 %v5106_v49, 16  ;;  %v503_v56 = vld [vmem:[#allocation2 + $0x24] sm:$0x1]  ;;  %v387_v57 = vsel %vm4996_vm5, 0, %v386_v35 }
  0x34   : > { %v584_v58 = vrot.slane %v582_v50, 4  ;;  %v587_v59 = vrot.slane %v585_v44, 5  ;;  %v593_v60 = vrot.slane %v591_v51, 5  ;;  %v598_v61 = vrot.slane %v596_v52, 4  ;;  %v506_v62 = vld [vmem:[#allocation2 + $0x28] sm:$0xf] }
  0x35   : > { %388 = vst [vmem:[#allocation2 + $0x3c] sm:$0x1] %v387_v57  ;;  %v580_v63 = vsel %vm5083_vm9, %v575_v53, %v579_v36  ;;  %v601_v0 = vrot.slane %v599_v54, 5  ;;  %v607_v1 = vrot.slane %v605_v55, 5  ;;  %v504_v4 = vsel %vm4984_vm3, %v431_v37, %v503_v56  ;;  %v509_v5 = vld [vmem:[#allocation2 + $0x2c] sm:$0x1] }
  0x36   : > { %v397_v6 = vld [vmem:[%s5003_s29 + $0x14] sm:$0xf]  ;;  %v4090_v8 = vcombine.low %v566_v41, %v580_v63  ;;  %v588_v9 = vor.u32 %v587_v59, %v584_v58  ;;  %505 = vst [vmem:[#allocation2 + $0x24] sm:$0x1] %v504_v4  ;;  %v507_v12 = vsel %vm5020_vm6, %v438_v47, %v506_v62  ;;  %v510_v13 = vsel %vm4984_vm3, %v439_v38, %v509_v5  ;;  %v398_v14 = vld [vmem:[%s5003_s29 + $0x18] sm:$0xf] }
  0x37   : > { %v602_v15 = vor.u32 %v601_v0, %v598_v61  ;;  %508 = vst [vmem:[#allocation2 + $0x28] sm:$0xf] %v507_v12  ;;  %511 = vst [vmem:[#allocation2 + $0x2c] sm:$0x1] %v510_v13  ;;  %v441_v17 = vshrl.u32 %v397_v6, 16  ;;  %v444_v18 = vshll.u32 %v397_v6, 16 }
  0x38   : > { %v449_v21 = vshrl.u32 %v398_v14, 16  ;;  %4445 = vmatprep.mubr.msk.bf16.mxu1 %vm693_vm10, %v4090_v8  ;;  %v589_v22 = vrot.slane %v588_v9, 4  ;;  %v452_v23 = vshll.u32 %v398_v14, 16  ;;  %v512_v24 = vld [vmem:[#allocation2 + $0x30] sm:$0xf]  ;;  %v909_v34 = vrot.slane %v5034_v26, 5 }
  0x39   : > { %v515_v28 = vld [vmem:[#allocation2 + $0x34] sm:$0x1]  ;;  %v518_v29 = vld [vmem:[#allocation2 + $0x38] sm:$0xf]  ;;  %v603_v30 = vrot.slane %v602_v15, 4  ;;  %v443_v32 = vrot.slane %v441_v17, 7 }
  0x3a   : > { %v5127_v31 = vld [vmem:[#allocation2 + $0x20] sm:$0xf]  ;;  %v451_v33 = vrot.slane %v449_v21, 7  ;;  %v594_v35 = vsel %vm5083_vm9, %v589_v22, %v593_v60  ;;  %v913_v39 = vrot.slane %v5077_v19, 5  ;;  %v881_v50 = vld [vmem:[#allocation2 + $0x8] sm:$0xe] }
  0x3b   : > { %v610_v36 = vshrl.u32 %v5127_v31, 16  ;;  %v613_v37 = vshll.u32 %v5127_v31, 16  ;;  %v880_v38 = vld [vmem:[#allocation2] sm:$0xe]  ;;  %v608_v40 = vsel %vm5083_vm9, %v603_v30, %v607_v1  ;;  %v446_v41 = vor.u32 %v444_v18, %v443_v32  ;;  %v882_v54 = vld [vmem:[#allocation2 + $0x10] sm:$0xe] }
  0x3c   : > { %v447_v42 = vrot.slane %v443_v32, 4  ;;  %v454_v47 = vor.u32 %v452_v23, %v451_v33  ;;  %v521_v48 = vld [vmem:[#allocation2 + $0x3c] sm:$0x1]  ;;  %v4091_v44 = vcombine.low %v594_v35, %v608_v40  ;;  %v4724_v52 = vld [vmem:[%s5942_s1] sm:$0xff]   ;;  %v455_v53 = vrot.slane %v451_v33, 4  ;;  %s4809_s26 = sshll.u32 %s4871_s25, 4  ;;  %s4810_s26 = int_to_ptr.vmem [resolvable:$false] %s4809_s26 }
  0x3d   : > { %v612_v26 = vrot.slane %v610_v36, 4  ;;  %v615_v51 = vrot.slane %v613_v37, 5  ;;  %v546_v55 = vld [vmem:[#allocation2 + $0x24] sm:$0x1]  ;;  %v513_v56 = vsel %vm5020_vm6, %v446_v41, %v512_v24  ;;  %v4110_v59 = vrot.slane %v880_v38, 9  ;;  %v5167_v15 = vld [vmem:[%s5942_s1 + $0x38] sm:$0xff]  }
  0x3e   : > { %v516_v57 = vsel %vm4984_vm3, %v447_v42, %v515_v28  ;;  %v519_v58 = vsel %vm5020_vm6, %v454_v47, %v518_v29  ;;  %v883_v60 = vld [vmem:[#allocation2 + $0x18] sm:$0xe]  ;;  %4446 = vmatmul.mubr.msk.bf16.vlgmr.msra.gmra.mxu1 %vm693_vm10, %v4091_v44  ;;  %v5153_v61 = vld [vmem:[#allocation2 + $0x28] sm:$0xf]  ;;  %v547_v62 = vld [vmem:[#allocation2 + $0x2c] sm:$0x1]  ;;  %v522_v1 = vsel %vm4984_vm3, %v455_v53, %v521_v48 }
  0x3f   : > { %v616_v63 = vor.u32 %v615_v51, %v612_v26  ;;  %v619_v0 = vshll.u32 %v546_v55, 16  ;;  %514 = vst [vmem:[#allocation2 + $0x30] sm:$0xf] %v513_v56  ;;  %517 = vst [vmem:[#allocation2 + $0x34] sm:$0x1] %v516_v57  ;;  %v4111_v4 = vrot.slane %v881_v50, 9  ;;  %4454 = vmatpush3.bf16.msra.mxu1 %v5011_v10  ;;  %v910_v9 = vsel %vm5142_vm13, %v4110_v59, %v909_v34 }
  0x40   : > { %520 = vst [vmem:[#allocation2 + $0x38] sm:$0xf] %v519_v58  ;;  %v624_v5 = vshrl.u32 %v5153_v61, 16  ;;  %v627_v6 = vshll.u32 %v5153_v61, 16  ;;  %v633_v8 = vshll.u32 %v547_v62, 16  ;;  %4455 = vmatprep.subr.bf16.mxu1 %v4724_v52  ;;  %v4112_v14 = vrot.slane %v882_v54, 9 }
  0x41   : > { %523 = vst [vmem:[#allocation2 + $0x3c] sm:$0x1] %v522_v1  ;;  %v617_v12 = vrot.slane %v616_v63, 4  ;;  %v914_v13 = vsel %vm5142_vm13, %v4111_v4, %v913_v39  ;;  %v621_v10 = vrot.slane %v619_v0, 5  ;;  %v917_v23 = vrot.slane %v5102_v46, 5  ;;  %v4732_v42 = vld [vmem:[%s5942_s1 + $0x40] sm:$0xff]  }
  0x42   : > { %v626_v17 = vrot.slane %v624_v5, 4  ;;  %v629_v18 = vrot.slane %v627_v6, 5  ;;  %v4118_v21 = vcombine.low %v910_v9, %v914_v13  ;;  %v635_v22 = vrot.slane %v633_v8, 5  ;;  %v884_v29 = vld [vmem:[#allocation2 + $0x20] sm:$0xe]  ;;  %v5201_v5 = vld [vmem:[%s5942_s1 + $0x68] sm:$0xff]  }
  0x43   : > { %v4113_v24 = vrot.slane %v883_v60, 9  ;;  %v921_v28 = vrot.slane %v5106_v49, 5  ;;  %4456 = vmatpush3.bf16.msra.mxu1 %v4724_v52  ;;  %v885_v32 = vld [vmem:[#allocation2 + $0x28] sm:$0xe]  ;;  %v4114_v33 = vrot.slane %v884_v29, 9  ;;  %v925_v34 = vrot.slane %v546_v55, 5 }
  0x44   : > { %v630_v30 = vor.u32 %v629_v18, %v626_v17  ;;  %4469 = vmatprep.mubr.msk.bf16.mxu0 %vm693_vm10, %v4118_v21  ;;  %v929_v35 = vrot.slane %v547_v62, 5  ;;  %v918_v36 = vsel %vm5142_vm13, %v4112_v14, %v917_v23  ;;  %4477 = vmatprep.subr.bf16.mxu1 %v5167_v15  ;;  %v4115_v46 = vrot.slane %v885_v32, 9  ;;  %v5205_v17 = vld [vmem:[#allocation2 + $0xc] sm:$0x1]  ;;  %v1183_v23 = vld [vmem:[#allocation2 + $0x10] sm:$0xf] }
  0x45   : > { %v922_v37 = vsel %vm5142_vm13, %v4113_v24, %v921_v28  ;;  %v622_v49 = vsel %vm5083_vm9, %v617_v12, %v621_v10  ;;  %v926_v26 = vsel %vm5142_vm13, %v4114_v33, %v925_v34  ;;  %v1181_v10 = vld [vmem:[#allocation2 + $0x8] sm:$0xf]  ;;  %v4100_v21 = vcombine.low %v5032_v25, %v5074_v16  ;;  %v5211_v24 = vld [vmem:[#allocation2 + $0x14] sm:$0x1]  ;;  %v1185_v34 = vld [vmem:[#allocation2 + $0x18] sm:$0xf] }
  0x46   : > { %v631_v38 = vrot.slane %v630_v30, 4  ;;  %v5179_v39 = vld [vmem:[#allocation2 + $0x30] sm:$0xf]  ;;  %v4119_v41 = vcombine.low %v918_v36, %v922_v37  ;;  %v548_v47 = vld [vmem:[#allocation2 + $0x34] sm:$0x1]  ;;  %v930_v51 = vsel %vm5142_vm13, %v4115_v46, %v929_v35  ;;  %v1198_v28 = vshrl.u32 %v1181_v10, 16 }
  0x47   : > { %v5181_v40 = vld [vmem:[#allocation2 + $0x38] sm:$0xf]  ;;  %v638_v50 = vshrl.u32 %v5179_v39, 16  ;;  %v641_v44 = vshll.u32 %v5179_v39, 16  ;;  %v647_v53 = vshll.u32 %v548_v47, 16  ;;  %v4120_v4 = vcombine.low %v926_v26, %v930_v51  ;;  %s4811_s28 = scalar_lea.vmem %s4810_s26, 32 }
  0x48   : > { %v549_v48 = vld [vmem:[#allocation2 + $0x3c] sm:$0x1]  ;;  %v636_v52 = vsel %vm5083_vm9, %v631_v38, %v635_v22  ;;  %v652_v54 = vshrl.u32 %v5181_v40, 16  ;;  %v655_v55 = vshll.u32 %v5181_v40, 16  ;;  %4470 = vmatmul.mubr.msk.bf16.vlgmr.msra.gmra.mxu0 %vm693_vm10, %v4119_v41  ;;  %v886_v56 = vld [vmem:[#allocation2 + $0x30] sm:$0xe] }
  0x49   : > { %v4092_v57 = vcombine.low %v622_v49, %v636_v52  ;;  %v640_v58 = vrot.slane %v638_v50, 4  ;;  %v643_v59 = vrot.slane %v641_v44, 5  ;;  %v661_v60 = vshll.u32 %v549_v48, 16  ;;  %4490 = vmatpush3.bf16.msra.mxu0 %v5072_v11  ;;  %v887_v62 = vld [vmem:[#allocation2 + $0x38] sm:$0xe]  ;;  %4473 = vmatprep.mubr.msk.bf16.mxu0 %vm693_vm10, %v4120_v4 }
  0x4a   : > { %v649_v63 = vrot.slane %v647_v53, 5  ;;  %v654_v0 = vrot.slane %v652_v54, 4  ;;  %v657_v1 = vrot.slane %v655_v55, 5  ;;  %4491 = vmatprep.subr.bf16.mxu0 %v4732_v42  ;;  %v4116_v9 = vrot.slane %v886_v56, 9  ;;  %v5219_v37 = vld [vmem:[#allocation2 + $0x1c] sm:$0x1] }
  0x4b   : > { %4449 = vmatprep.mubr.msk.bf16.mxu1 %vm693_vm10, %v4092_v57  ;;  %v644_v6 = vor.u32 %v643_v59, %v640_v58  ;;  %v663_v8 = vrot.slane %v661_v60, 5  ;;  %v933_v12 = vrot.slane %v548_v47, 5  ;;  %v4117_v11 = vrot.slane %v887_v62, 9  ;;  %v1187_v46 = vld [vmem:[#allocation2 + $0x20] sm:$0xf] }
  0x4c   : > { %v658_v13 = vor.u32 %v657_v1, %v654_v0  ;;  %v937_v14 = vrot.slane %v549_v48, 5  ;;  %v1201_v32 = vshll.u32 %v1181_v10, 16  ;;  %v1207_v33 = vshll.u32 %v5205_v17, 16  ;;  %v5223_v47 = vld [vmem:[#allocation2 + $0x24] sm:$0x1]  ;;  %v4730_v10 = vld [vmem:[%s5942_s1 + $0x30] sm:$0xff]  }
  0x4d   : > { %v645_v18 = vrot.slane %v644_v6, 4  ;;  %v934_v22 = vsel %vm5142_vm13, %v4116_v9, %v933_v12  ;;  %4492 = vmatpush3.bf16.msra.mxu0 %v4732_v42  ;;  %v1200_v35 = vrot.slane %v1198_v28, 4  ;;  %v1212_v36 = vshrl.u32 %v1183_v23, 16  ;;  %v4737_v3 = vld [vmem:[#allocation2 + $0x28] ss:$8 sps:$4 sm:$0xff]  }
  0x4e   : > { %v659_v29 = vrot.slane %v658_v13, 4  ;;  %v938_v30 = vsel %vm5142_vm13, %v4117_v11, %v937_v14  ;;  %4513 = vmatprep.subr.bf16.mxu0 %v5201_v5  ;;  %v1203_v38 = vrot.slane %v1201_v32, 5  ;;  %v1209_v41 = vrot.slane %v1207_v33, 5  ;;  %v5246_v32 = vld [vmem:[#allocation2 + $0x34] sm:$0x1] }
  0x4f   : > { %v650_v25 = vsel %vm5083_vm9, %v645_v18, %v649_v63  ;;  %v4121_v16 = vcombine.low %v934_v22, %v938_v30  ;;  %v1215_v42 = vshll.u32 %v1183_v23, 16  ;;  %v1214_v50 = vrot.slane %v1212_v36, 4  ;;  %v1189_v22 = vld [vmem:[#allocation2 + $0x28] sm:$0xf]  ;;  %v1191_v30 = vld [vmem:[#allocation2 + $0x30] sm:$0xf] }
  0x50   : > { %v664_v49 = vsel %vm5083_vm9, %v659_v29, %v663_v8  ;;  %v1221_v44 = vshll.u32 %v5211_v24, 16  ;;  %v1226_v26 = vshrl.u32 %v1185_v34, 16  ;;  %v1204_v51 = vor.u32 %v1203_v38, %v1200_v35  ;;  %v5242_v29 = vld [vmem:[#allocation2 + $0x2c] sm:$0x1]  ;;  %v363_v36 = vld [vmem:[#allocation2 + $0x40] sm:$0x1] }
  0x51   : > { %v4093_v48 = vcombine.low %v650_v25, %v664_v49  ;;  %4474 = vmatmul.mubr.msk.bf16.gmra.mxu0 %vm693_vm10, %v4121_v16  ;;  %v1217_v52 = vrot.slane %v1215_v42, 5  ;;  %v1229_v53 = vshll.u32 %v1185_v34, 16  ;;  %v1235_v54 = vshll.u32 %v5219_v37, 16  ;;  %v4740_v42 = vld [vmem:[%s5942_s1 + $0x60] sm:$0xff]   ;;  %v2393_v27 = vld [vmem:[#allocation3 + $0x8] sm:$0x1] }
  0x52   : > { %v1228_v55 = vrot.slane %v1226_v26, 4  ;;  %v1240_v56 = vshrl.u32 %v1187_v46, 16  ;;  %v1243_v57 = vshll.u32 %v1187_v46, 16  ;;  %v1205_v58 = vrot.slane %v1204_v51, 4  ;;  %v399_v26 = vld [vmem:[%s5003_s29 + $0x1c] sm:$0xf] }
  0x53   : > { %4450 = vmatmul.mubr.msk.bf16.gmra.mxu1 %vm693_vm10, %v4093_v48  ;;  %v1218_v59 = vor.u32 %v1217_v52, %v1214_v50  ;;  %v1223_v60 = vrot.slane %v1221_v44, 5  ;;  %v1231_v62 = vrot.slane %v1229_v53, 5  ;;  %v1249_v1 = vshll.u32 %v5223_v47, 16  ;;  %v5262_v48 = vld [vmem:[%s5942_s1 + $0x58] sm:$0xff]   ;;  %2384 = vst.msk [vmem:[#allocation3] sm:$0x7] %vm2383_vm0, %v4867_v2 }
  0x54   : > { %4457 = vmatprep.mubr.msk.bf16.mxu1 %vm693_vm10, %v4100_v21  ;;  %v1242_v63 = vrot.slane %v1240_v56, 4  ;;  %v1245_v0 = vrot.slane %v1243_v57, 5  ;;  %v1210_v4 = vsel %vm5083_vm9, %v1205_v58, %v1209_v41  ;;  %v1237_v9 = vrot.slane %v1235_v54, 5  ;;  %v389_v41 = vld [vmem:[#allocation2 + $0x44] sm:$0x1]  ;;  %s324_s29 = scalar_lea.vmem [#allocation4], %s323_s27 }
  0x55   : > { %v1219_v6 = vrot.slane %v1218_v59, 4  ;;  %v1232_v8 = vor.u32 %v1231_v62, %v1228_v55  ;;  %v4101_v12 = vcombine.low %v5098_v43, %v5100_v45  ;;  %v1251_v11 = vrot.slane %v1249_v1, 5  ;;  %v4733_v58 = vld [vmem:[#allocation2 + $0x8] ss:$8 sps:$4 sm:$0xff]   ;;  %2386 = vst.msk [vmem:[#allocation3 + $0x14] sm:$0x7] %vm2383_vm0, %v4867_v2 }
  0x56   : > { %v1246_v13 = vor.u32 %v1245_v0, %v1242_v63  ;;  %v4102_v14 = vcombine.low %v5127_v31, %v5153_v61  ;;  %v1254_v43 = vshrl.u32 %v1189_v22, 16  ;;  %v1257_v31 = vshll.u32 %v1189_v22, 16  ;;  %v1193_v63 = vld [vmem:[#allocation2 + $0x38] sm:$0xf]  ;;  %v5281_v0 = vld [vmem:[#allocation2 + $0x3c] sm:$0x1] }
  0x57   : > { %v1224_v18 = vsel %vm5083_vm9, %v1219_v6, %v1223_v60  ;;  %v1233_v21 = vrot.slane %v1232_v8, 4  ;;  %v1263_v61 = vshll.u32 %v5242_v29, 16  ;;  %v1268_v33 = vshrl.u32 %v1191_v30, 16  ;;  %s4029_s17 = sshll.u32 %s324_s29, 4  ;;  %s5902_s17 = int_to_ptr.vmem [resolvable:$true] %s4029_s17 }
  0x58   : > { %v4138_v23 = vcombine.low %v1210_v4, %v1224_v18  ;;  %v1247_v28 = vrot.slane %v1246_v13, 4  ;;  %v1256_v25 = vrot.slane %v1254_v43, 4  ;;  %v1271_v16 = vshll.u32 %v1191_v30, 16  ;;  %s4805_s13 = scalar_lea.vmem %s5902_s17, 16  ;;  %p4812_p0 = scmp.lt.s32.totalorder %s5902_s17, %s4810_s26 }
  0x59   : > { %v1238_v45 = vsel %vm5083_vm9, %v1233_v21, %v1237_v9  ;;  %v1277_v35 = vshll.u32 %v5246_v32, 16  ;;  %v1259_v49 = vrot.slane %v1257_v31, 5  ;;  %v1270_v38 = vrot.slane %v1268_v33, 4  ;;  %v5307_v33 = vld [vmem:[%s5942_s1 + $0x78] sm:$0xff]   ;;  %p4806_p11 = scmp.ne.s32.totalorder %s5902_s17, %s4805_s13  ;;  %p4813_p1 = scmp.lt.s32.totalorder %s4811_s28, %s4805_s13 }
  0x5a   : > { %4493 = vmatprep.mubr.msk.bf16.mxu0 %vm693_vm10, %v4138_v23  ;;  %v1252_v34 = vsel %vm5083_vm9, %v1247_v28, %v1251_v11  ;;  %v1273_v50 = vrot.slane %v1271_v16, 5  ;;  %v390_v44 = vsel %vm4996_vm5, 0, %v389_v41  ;;  %v1265_v52 = vrot.slane %v1263_v61, 5  ;;  %v4738_v23 = vld [vmem:[%s5942_s1 + $0x50] sm:$0xff]   ;;  %v1424_v61 = vld [vmem:[#allocation2 + $0x18] sm:$0xe] }
  0x5b   : > { %4458 = vmatmul.mubr.msk.bf16.vlgmr.msra.gmra.mxu1 %vm693_vm10, %v4101_v12  ;;  %v4139_v46 = vcombine.low %v1238_v45, %v1252_v34  ;;  %v1260_v51 = vor.u32 %v1259_v49, %v1256_v25  ;;  %391 = vst [vmem:[#allocation2 + $0x44] sm:$0x1] %v390_v44  ;;  %v457_v53 = vshrl.u32 %v399_v26, 16  ;;  %v460_v54 = vshll.u32 %v399_v26, 16  ;;  %v4735_v12 = vld [vmem:[#allocation2 + $0x18] ss:$8 sps:$4 sm:$0xff]   ;;  %p4807_p12 = pnand %p4806_p11, %p4960_p5  ;;  %p4814_p2 = por %p4813_p1, %p4812_p0 }
  0x5c   : > { %4478 = vmatpush3.bf16.msra.mxu1 %v5167_v15  ;;  %4461 = vmatprep.mubr.msk.bf16.mxu1 %vm693_vm10, %v4102_v14  ;;  %v364_v15 = vsel %vm4984_vm3, 0, %v363_v36  ;;  %v4103_v55 = vcombine.low %v5179_v39, %v5181_v40  ;;  %v1274_v56 = vor.u32 %v1273_v50, %v1270_v38  ;;  %v1279_v57 = vrot.slane %v1277_v35, 5  ;;  %v1423_v28 = vld [vmem:[#allocation2 + $0x10] sm:$0xe]  ;;  %v1425_v34 = vld [vmem:[#allocation2 + $0x20] sm:$0xe] }
  0x5d   : > { %4479 = vmatprep.subr.bf16.mxu1 %v4730_v10  ;;  %4494 = vmatmul.mubr.msk.bf16.vlgmr.msra.gmra.mxu0 %vm693_vm10, %v4139_v46  ;;  %365 = vst [vmem:[#allocation2 + $0x40] sm:$0x1] %v364_v15  ;;  %v1261_v59 = vrot.slane %v1260_v51, 4  ;;  %v459_v60 = vrot.slane %v457_v53, 7  ;;  %v1448_v1 = vrot.slane %v5205_v17, 5  ;;  %v1282_v8 = vshrl.u32 %v1193_v63, 16  ;;  %p4808_p13 = pneg %p4807_p12 }
  0x5e   : > { %4514 = vmatpush3.bf16.msra.mxu0 %v5201_v5  ;;  %v1275_v62 = vrot.slane %v1274_v56, 4  ;;  %v1285_v9 = vshll.u32 %v1193_v63, 16  ;;  %v1452_v18 = vrot.slane %v5211_v24, 5  ;;  %v1456_v21 = vrot.slane %v5219_v37, 5  ;;  %v1426_v25 = vld [vmem:[#allocation2 + $0x28] sm:$0xe] }
  0x5f   : > { %4515 = vmatprep.subr.bf16.mxu0 %v4740_v42  ;;  %v1266_v39 = vsel %vm5083_vm9, %v1261_v59, %v1265_v52  ;;  %v462_v40 = vor.u32 %v460_v54, %v459_v60  ;;  %v463_v5 = vrot.slane %v459_v60, 4  ;;  %v1291_v22 = vshll.u32 %v5281_v0, 16  ;;  %v1427_v36 = vld [vmem:[#allocation2 + $0x30] sm:$0xe]  ;;  %v1428_v46 = vld [vmem:[#allocation2 + $0x38] sm:$0xe]  ;;  %p4815_p3 = pnand %p4814_p2, %p4808_p13 }
  0x60   : > { %4480 = vmatpush3.bf16.msra.mxu1 %v4730_v10  ;;  %v1280_v4 = vsel %vm5083_vm9, %v1275_v62, %v1279_v57  ;;  %v1422_v10 = vld [vmem:[#allocation2 + $0x8] sm:$0xe]  ;;  %v1460_v20 = vrot.slane %v5223_v47, 5  ;;  %v1284_v30 = vrot.slane %v1282_v8, 4  ;;  %v1287_v43 = vrot.slane %v1285_v9, 5 }
  0x61   : > { %4501 = vmatprep.subr.bf16.mxu1 %v5262_v48  ;;  %v4140_v6 = vcombine.low %v1266_v39, %v1280_v4  ;;  %v4148_v45 = vrot.slane %v1422_v10, 9  ;;  %v4149_v31 = vrot.slane %v1423_v28, 9  ;;  %v1464_v24 = vrot.slane %v5242_v29, 5  ;;  %v5335_v8 = vld [vmem:[#allocation2 + $0x18] sm:$0xe] }
  0x62   : > { %4516 = vmatpush3.bf16.msra.mxu0 %v4740_v42  ;;  %v527_v11 = vld [vmem:[#allocation2 + $0x44] sm:$0x1]  ;;  %v1468_v37 = vrot.slane %v5246_v32, 5  ;;  %v4150_v47 = vrot.slane %v1424_v61, 9  ;;  %v1472_v16 = vrot.slane %v5281_v0, 5  ;;  %v1288_v35 = vor.u32 %v1287_v43, %v1284_v30 }
  0x63   : > { %4462 = vmatmul.mubr.msk.bf16.gmra.mxu1 %vm693_vm10, %v4103_v55  ;;  %4537 = vmatprep.subr.bf16.mxu0 %v5276_v7  ;;  %v528_v14 = vsel %vm4984_vm3, %v463_v5, %v527_v11  ;;  %v1449_v29 = vsel %vm5142_vm13, %v4148_v45, %v1448_v1  ;;  %v1453_v32 = vsel %vm5142_vm13, %v4149_v31, %v1452_v18  ;;  %v4151_v15 = vrot.slane %v1425_v34, 9  ;;  %v1962_v5 = vld [vmem:[#allocation2 + $0x10] sm:$0xe]  ;;  %v5342_v18 = vld [vmem:[#allocation2 + $0x24] sm:$0x1] }
  0x64   : > { %4481 = vmatprep.mubr.msk.bf16.mxu1 %vm693_vm10, %v4733_v58  ;;  %v524_v13 = vld [vmem:[#allocation2 + $0x40] sm:$0xf]  ;;  %4497 = vmatprep.mubr.msk.bf16.mxu0 %vm693_vm10, %v4140_v6  ;;  %529 = vst [vmem:[#allocation2 + $0x44] sm:$0x1] %v528_v14  ;;  %v4156_v44 = vcombine.low %v1449_v29, %v1453_v32  ;;  %v4152_v26 = vrot.slane %v1426_v25, 9  ;;  %v4153_v51 = vrot.slane %v1427_v36, 9  ;;  %v1457_v63 = vsel %vm5142_vm13, %v4150_v47, %v1456_v21 }
  0x65   : > { %v525_v17 = vsel %vm5020_vm6, %v462_v40, %v524_v13  ;;  %v1289_v53 = vrot.slane %v1288_v35, 4  ;;  %v1293_v54 = vrot.slane %v1291_v22, 5  ;;  %v4154_v57 = vrot.slane %v1428_v46, 9  ;;  %v1722_v40 = vld [vmem:[#allocation2 + $0x14] sm:$0x1] }
  0x66   : > { %526 = vst [vmem:[#allocation2 + $0x40] sm:$0xf] %v525_v17  ;;  %v1461_v39 = vsel %vm5142_vm13, %v4151_v15, %v1460_v20  ;;  %v1465_v0 = vsel %vm5142_vm13, %v4152_v26, %v1464_v24  ;;  %v1469_v1 = vsel %vm5142_vm13, %v4153_v51, %v1468_v37  ;;  %v5339_v13 = vld [vmem:[#allocation2 + $0x1c] sm:$0x1]  ;;  %v4186_v11 = vrot.slane %v1962_v5, 9  ;;  %v4747_v37 = vld [vmem:[%s5942_s1 + $0x70] sm:$0xff]  }
  0x67   : > { %v5329_v4 = vsel %vm5142_vm13, %v4154_v57, %v1472_v16  ;;  %v1294_v9 = vsel %vm5083_vm9, %v1289_v53, %v1293_v54  ;;  %v1988_v17 = vrot.slane %v1722_v40, 5  ;;  %v4741_v14 = vld [vmem:[#allocation2 + $0x10] ss:$8 sps:$4 sm:$0xff]   ;;  %v4187_v10 = vrot.slane %v5335_v8, 9  ;;  %v5348_v20 = vld [vmem:[#allocation2 + $0x2c] sm:$0x1] }
  0x68   : > { %v4157_v22 = vcombine.low %v1457_v63, %v1461_v39  ;;  %v1721_v30 = vld [vmem:[#allocation2 + $0x10] sm:$0xf]  ;;  %v1723_v43 = vld [vmem:[#allocation2 + $0x18] sm:$0xf]  ;;  %v1992_v45 = vrot.slane %v5339_v13, 5  ;;  %v1996_v25 = vrot.slane %v5342_v18, 5 }
  0x69   : > { %v1738_v31 = vshrl.u32 %v1721_v30, 16  ;;  %v1741_v61 = vshll.u32 %v1721_v30, 16  ;;  %v1725_v24 = vld [vmem:[#allocation2 + $0x20] sm:$0xf]  ;;  %v5356_v34 = vsel %vm5142_vm13, %v4186_v11, %v1988_v17  ;;  %v1747_v16 = vshll.u32 %v1722_v40, 16 }
  0x6a   : > { %v5358_v47 = vld [vmem:[#allocation2 + $0x20] sm:$0xe]  ;;  %v1752_v35 = vshrl.u32 %v1723_v43, 16  ;;  %v2000_v29 = vrot.slane %v5348_v20, 5  ;;  %v1755_v46 = vshll.u32 %v1723_v43, 16  ;;  %v1769_v51 = vshll.u32 %v1725_v24, 16 }
  0x6b   : > { %4482 = vmatmul.mubr.msk.bf16.vlgmr.msra.gmra.mxu1 %vm693_vm10, %v4735_v12  ;;  %v1196_v38 = vld [vmem:[#allocation2 + $0x44] sm:$0x1]  ;;  %v1740_v32 = vrot.slane %v1738_v31, 4  ;;  %v1743_v36 = vrot.slane %v1741_v61, 5  ;;  %v1965_v15 = vld [vmem:[#allocation2 + $0x28] sm:$0xe] }
  0x6c   : > { %4502 = vmatpush3.bf16.msra.mxu1 %v5262_v48  ;;  %4485 = vmatprep.mubr.msk.bf16.mxu1 %vm693_vm10, %v4737_v3  ;;  %v1305_v48 = vshll.u32 %v1196_v38, 16  ;;  %v1476_v59 = vrot.slane %v1196_v38, 5  ;;  %v1749_v38 = vrot.slane %v1747_v16, 5  ;;  %v1757_v26 = vrot.slane %v1755_v46, 5  ;;  %v4745_v53 = vld [vmem:[#allocation2 + $0x30] ss:$8 sps:$4 sm:$0xff]  }
  0x6d   : > { %4503 = vmatprep.subr.bf16.mxu1 %v4738_v23  ;;  %v1195_v49 = vld [vmem:[#allocation2 + $0x40] sm:$0xf]  ;;  %v4188_v54 = vrot.slane %v5358_v47, 9  ;;  %v1966_v63 = vld [vmem:[#allocation2 + $0x30] sm:$0xe]  ;;  %v4189_v39 = vrot.slane %v1965_v15, 9 }
  0x6e   : > { %v1296_v41 = vshrl.u32 %v1195_v49, 16  ;;  %v1299_v42 = vshll.u32 %v1195_v49, 16  ;;  %v4739_v50 = vld [vmem:[#allocation2 + $0x38] ss:$8 sps:$4 sm:$0xff]   ;;  %v1307_v62 = vrot.slane %v1305_v48, 5  ;;  %v1766_v48 = vshrl.u32 %v1725_v24, 16 }
  0x6f   : > { %v1429_v52 = vld [vmem:[#allocation2 + $0x40] sm:$0xe]  ;;  %v1727_v49 = vld [vmem:[#allocation2 + $0x28] sm:$0xf]  ;;  %v1732_v17 = vld [vmem:[#allocation2 + $0x3c] sm:$0x1]  ;;  %v1997_v46 = vsel %vm5142_vm13, %v4188_v54, %v1996_v25 }
  0x70   : > { %4504 = vmatpush3.bf16.msra.mxu1 %v4738_v23  ;;  %v1298_v55 = vrot.slane %v1296_v41, 4  ;;  %v1301_v56 = vrot.slane %v1299_v42, 5  ;;  %v4155_v58 = vrot.slane %v1429_v52, 9  ;;  %v4158_v23 = vcombine.low %v1465_v0, %v1469_v1  ;;  %v1730_v1 = vld [vmem:[#allocation2 + $0x34] sm:$0x1] }
  0x71   : > { %4525 = vmatprep.subr.bf16.mxu1 %v5307_v33  ;;  %v1754_v41 = vrot.slane %v1752_v35, 4  ;;  %v1761_v42 = vshll.u32 %v5339_v13, 16  ;;  %v1775_v52 = vshll.u32 %v5342_v18, 16  ;;  %v1783_v57 = vshll.u32 %v1727_v49, 16  ;;  %v5380_v43 = vld [vmem:[#allocation2 + $0x40] sm:$0xe] }
  0x72   : > { %v1302_v60 = vor.u32 %v1301_v56, %v1298_v55  ;;  %v5333_v6 = vsel %vm5142_vm13, %v4155_v58, %v1476_v59  ;;  %v1768_v55 = vrot.slane %v1766_v48, 4  ;;  %v1780_v56 = vshrl.u32 %v1727_v49, 16  ;;  %v4748_v58 = vld [vmem:[%s5942_s1 + $0x80] sm:$0xff]   ;;  %v1735_v49 = vld [vmem:[#allocation2 + $0x48] sm:$0xf] }
  0x73   : > { %4486 = vmatmul.mubr.msk.bf16.gmra.mxu1 %vm693_vm10, %v4739_v50  ;;  %v4159_v28 = vcombine.low %v5329_v4, %v5333_v6  ;;  %v4742_v50 = vld [vmem:[#allocation2 + $0x20] ss:$8 sps:$4 sm:$0xff]   ;;  %v1758_v59 = vor.u32 %v1757_v26, %v1754_v41  ;;  %v1785_v5 = vrot.slane %v1783_v57, 5  ;;  %v1789_v0 = vshll.u32 %v5348_v20, 16  ;;  %v1734_v18 = vld [vmem:[#allocation2 + $0x44] sm:$0x1] }
  0x74   : > { %4505 = vmatprep.mubr.msk.bf16.mxu1 %vm693_vm10, %v4156_v44  ;;  %v1303_v12 = vrot.slane %v1302_v60, 4  ;;  %v1744_v44 = vor.u32 %v1743_v36, %v1740_v32  ;;  %v1763_v60 = vrot.slane %v1761_v42, 5  ;;  %v1782_v40 = vrot.slane %v1780_v56, 4  ;;  %v1733_v47 = vld [vmem:[#allocation2 + $0x40] sm:$0xf] }
  0x75   : > { %v1777_v11 = vrot.slane %v1775_v52, 5  ;;  %v4190_v30 = vrot.slane %v1966_v63, 9  ;;  %v2004_v24 = vrot.slane %v1730_v1, 5  ;;  %v4746_v16 = vld [vmem:[#allocation2 + $0x40] ss:$8 sps:$4 sm:$0xff]   ;;  %v2008_v36 = vrot.slane %v1732_v17, 5 }
  0x76   : > { %v1308_v21 = vsel %vm5083_vm9, %v1303_v12, %v1307_v62  ;;  %v1771_v62 = vrot.slane %v1769_v51, 5  ;;  %v1759_v12 = vrot.slane %v1758_v59, 4  ;;  %v1803_v41 = vshll.u32 %v1730_v1, 16  ;;  %v1969_v20 = vld [vmem:[#allocation2 + $0x48] sm:$0xe] }
  0x77   : > { %v4141_v3 = vcombine.low %v1294_v9, %v1308_v21  ;;  %v1993_v21 = vsel %vm5142_vm13, %v4187_v10, %v1992_v45  ;;  %v1817_v51 = vshll.u32 %v1732_v17, 16  ;;  %v1822_v52 = vshrl.u32 %v1733_v47, 16 }
  0x78   : > { %v1772_v13 = vor.u32 %v1771_v62, %v1768_v55  ;;  %v1764_v31 = vsel %vm5083_vm9, %v1759_v12, %v1763_v60  ;;  %v4194_v35 = vcombine.low %v5356_v34, %v1993_v21  ;;  %v2001_v34 = vsel %vm5142_vm13, %v4189_v39, %v2000_v29 }
  0x79   : > { %4498 = vmatmul.mubr.msk.bf16.gmra.mxu0 %vm693_vm10, %v4141_v3  ;;  %v1729_v3 = vld [vmem:[#allocation2 + $0x30] sm:$0xf]  ;;  %v1825_v29 = vshll.u32 %v1733_v47, 16  ;;  %v1831_v56 = vshll.u32 %v1734_v18, 16  ;;  %v1839_v59 = vshll.u32 %v1735_v49, 16  ;;  %v1819_v63 = vrot.slane %v1817_v51, 5 }
  0x7a   : > { %4517 = vmatprep.mubr.msk.bf16.mxu0 %vm693_vm10, %v4741_v14  ;;  %v1967_v14 = vld [vmem:[#allocation2 + $0x38] sm:$0xe]  ;;  %v1773_v61 = vrot.slane %v1772_v13, 4  ;;  %v1794_v6 = vshrl.u32 %v1729_v3, 16  ;;  %v4195_v17 = vcombine.low %v1997_v46, %v2001_v34  ;;  %vm2402_vm1 = vcmask 518146  }
  0x7b   : > { %4506 = vmatmul.mubr.msk.bf16.vlgmr.msra.gmra.mxu1 %vm693_vm10, %v4157_v22  ;;  %v1786_v22 = vor.u32 %v1785_v5, %v1782_v40  ;;  %v4191_v45 = vrot.slane %v1967_v14, 9  ;;  %v1827_v39 = vrot.slane %v1825_v29, 5  ;;  %v2012_v40 = vrot.slane %v1734_v18, 5  ;;  %v2405_v46 = vld [vmem:[#allocation3 + $0x4] sm:$0x4] }
  0x7c   : > { %4526 = vmatpush3.bf16.msra.mxu1 %v5307_v33  ;;  %4509 = vmatprep.mubr.msk.bf16.mxu1 %vm693_vm10, %v4158_v23  ;;  %v1745_v33 = vrot.slane %v1744_v44, 4  ;;  %v1791_v23 = vrot.slane %v1789_v0, 5  ;;  %v1778_v32 = vsel %vm5083_vm9, %v1773_v61, %v1777_v11  ;;  %v1796_v48 = vrot.slane %v1794_v6, 4  ;;  %v2414_v18 = vld [vmem:[#allocation3 + $0x10] sm:$0x4] }
  0x7d   : > { %4527 = vmatprep.subr.bf16.mxu1 %v4747_v37  ;;  %v1787_v10 = vrot.slane %v1786_v22, 4  ;;  %v1805_v44 = vrot.slane %v1803_v41, 5  ;;  %v2009_v57 = vsel %vm5142_vm13, %v4191_v45, %v2008_v36  ;;  %v1841_v0 = vrot.slane %v1839_v59, 5  ;;  %v4752_v59 = vld [vmem:[%s5945_s4 + $0x38] sm:$0xff]  }
  0x7e   : > { %v1750_v9 = vsel %vm5083_vm9, %v1745_v33, %v1749_v38  ;;  %v2005_v38 = vsel %vm5142_vm13, %v4190_v30, %v2004_v24  ;;  %v1836_v33 = vshrl.u32 %v1735_v49, 16  ;;  %v1833_v11 = vrot.slane %v1831_v56, 5 }
  0x7f   : > { %v4176_v8 = vcombine.low %v1750_v9, %v1764_v31  ;;  %v1792_v4 = vsel %vm5083_vm9, %v1787_v10, %v1791_v23  ;;  %v4193_v14 = vrot.slane %v1969_v20, 9  ;;  %v4196_v23 = vcombine.low %v2005_v38, %v2009_v57  ;;  %v2399_v38 = vld [vmem:[#allocation3 + $0x10] sm:$0x1] }
  0x80   : > { %4528 = vmatpush3.bf16.msra.mxu1 %v4747_v37  ;;  %v1731_v37 = vld [vmem:[#allocation2 + $0x38] sm:$0xf]  ;;  %v4177_v25 = vcombine.low %v1778_v32, %v1792_v4  ;;  %v1838_v5 = vrot.slane %v1836_v33, 4  ;;  %vm2403_vm3 = vsmask.f32 7946  ;;  %v2394_v19 = vsel %vm5431_vm15, 0, %v2393_v27 }
  0x81   : > { %4518 = vmatmul.mubr.msk.bf16.vlgmr.msra.gmra.mxu0 %vm693_vm10, %v4742_v50  ;;  %v1808_v42 = vshrl.u32 %v1731_v37, 16  ;;  %v1811_v15 = vshll.u32 %v1731_v37, 16  ;;  %vm5441_vm4 = vmand %vm2402_vm1, %vm2403_vm3  ;;  %v2408_v32 = vld [vmem:[#allocation3 + $0x8] sm:$0x4]  ;;  %2395 = vst [vmem:[#allocation3 + $0x8] sm:$0x1] %v2394_v19 }
  0x82   : > { %4538 = vmatpush3.bf16.msra.mxu0 %v5276_v7  ;;  %4521 = vmatprep.mubr.msk.bf16.mxu0 %vm693_vm10, %v4745_v53  ;;  %v4192_v7 = vrot.slane %v5380_v43, 9  ;;  %v1736_v53 = vld [vmem:[#allocation2 + $0x4c] sm:$0x1]  ;;  %v1842_v21 = vor.u32 %v1841_v0, %v1838_v5  ;;  %v2409_v36 = vsel %vm5441_vm4, 0, %v2408_v32  ;;  %v2406_v2 = vsel %vm5441_vm4, 0, %v2405_v46  ;;  %v4750_v33 = vld [vmem:[%s5945_s4 + $0x10] sm:$0xff]  }
  0x83   : > { %4510 = vmatmul.mubr.msk.bf16.gmra.mxu1 %vm693_vm10, %v4159_v28  ;;  %4539 = vmatprep.subr.bf16.mxu0 %v4748_v58  ;;  %v1797_v28 = vshll.u32 %v1729_v3, 16  ;;  %v1810_v26 = vrot.slane %v1808_v42, 4  ;;  %v1813_v55 = vrot.slane %v1811_v15, 5  ;;  %v1845_v1 = vshll.u32 %v1736_v53, 16  ;;  %2410 = vst [vmem:[#allocation3 + $0x8] sm:$0x4] %v2409_v36 }
  0x84   : > { %4529 = vmatprep.mubr.msk.bf16.mxu1 %vm693_vm10, %v4176_v8  ;;  %v2016_v30 = vrot.slane %v1736_v53, 5  ;;  %v1843_v61 = vrot.slane %v1842_v21, 4  ;;  %v2013_v8 = vsel %vm5142_vm13, %v4192_v7, %v2012_v40  ;;  %v2390_v7 = vld [vmem:[#allocation3 + $0x4] sm:$0x1]  ;;  %2407 = vst [vmem:[#allocation3 + $0x4] sm:$0x4] %v2406_v2 }
  0x85   : > { %v1799_v50 = vrot.slane %v1797_v28, 5  ;;  %v1814_v62 = vor.u32 %v1813_v55, %v1810_v26  ;;  %v1847_v22 = vrot.slane %v1845_v1, 5  ;;  %v2391_v4 = vsel %vm5431_vm15, 0, %v2390_v7  ;;  %v2411_v15 = vld [vmem:[#allocation3 + $0xc] sm:$0x4]  ;;  %v4753_v0 = vld [vmem:[%s5945_s4] sm:$0xff]  }
  0x86   : > { %4540 = vmatpush3.bf16.msra.mxu0 %v4748_v58  ;;  %v1824_v58 = vrot.slane %v1822_v52, 4  ;;  %v2017_v10 = vsel %vm5142_vm13, %v4193_v14, %v2016_v30  ;;  %2392 = vst [vmem:[#allocation3 + $0x4] sm:$0x1] %v2391_v4  ;;  %v2400_v41 = vsel %vm5431_vm15, 0, %v2399_v38  ;;  %v2415_v42 = vsel %vm5441_vm4, 0, %v2414_v18  ;;  %v4749_v55 = vld [vmem:[%s5945_s4 + $0x18] sm:$0xff]  }
  0x87   : > { %v1800_v54 = vor.u32 %v1799_v50, %v1796_v48  ;;  %v1815_v12 = vrot.slane %v1814_v62, 4  ;;  %v1848_v37 = vsel %vm5083_vm9, %v1843_v61, %v1847_v22  ;;  %v4197_v47 = vcombine.low %v2013_v8, %v2017_v10  ;;  %2401 = vst [vmem:[#allocation3 + $0x10] sm:$0x1] %v2400_v41  ;;  %2416 = vst [vmem:[#allocation3 + $0x10] sm:$0x4] %v2415_v42  ;;  %v4751_v62 = vld [vmem:[%s5945_s4 + $0x8] sm:$0xff]  }
  0x88   : > { %v1828_v13 = vor.u32 %v1827_v39, %v1824_v58  ;;  %v2396_v50 = vld [vmem:[#allocation3 + $0xc] sm:$0x1]  ;;  %v2412_v26 = vsel %vm5441_vm4, 0, %v2411_v15  ;;  %v4868_v29 = vmov 0.0   ;;  %vm4869_vm2 = vmmov 0   ;;  %v4758_v14 = vld [vmem:[%s5945_s4 + $0x28] sm:$0xff]  }
  0x89   : > { %4522 = vmatmul.mubr.msk.bf16.gmra.mxu0 %vm693_vm10, %v4746_v16  ;;  %v1801_v60 = vrot.slane %v1800_v54, 4  ;;  %v1820_v43 = vsel %vm5083_vm9, %v1815_v12, %v1819_v63  ;;  %2413 = vst [vmem:[#allocation3 + $0xc] sm:$0x4] %v2412_v26  ;;  %4561 = vmatprep.subr.bf16.mxu0 %v4868_v29  ;;  %v4754_v63 = vld [vmem:[%s5945_s4 + $0x30] sm:$0xff]   ;;  %v4760_v30 = vld [vmem:[%s5945_s4 + $0x20] sm:$0xff]   ;;  %vm2169_vm5 = vcmask 523264  }
  0x8a   : > { %4541 = vmatprep.mubr.msk.bf16.mxu0 %vm693_vm10, %v4194_v35  ;;  %v1829_v3 = vrot.slane %v1828_v13, 4  ;;  %4549 = vmatprep.subr.bf16.mxu1 %v4868_v29  ;;  %vm2270_vm6 = vcmask 517120   ;;  %vm2497_vm7 = vcmask 1042434   ;;  %vm2499_vm8 = vcmask 1043459  }
  0x8b   : > { %4530 = vmatmul.mubr.msk.bf16.vlgmr.msra.gmra.mxu1 %vm693_vm10, %v4177_v25  ;;  %v1806_v9 = vsel %vm5083_vm9, %v1801_v60, %v1805_v44  ;;  %v2397_v44 = vsel %vm5431_vm15, 0, %v2396_v50  ;;  %vm2587_vm12 = vsmask.f32 1280  ;;  %vm2588_vm13 = vsmask.f32 3336 }
  0x8c   : > { %v4178_v31 = vcombine.low %v1806_v9, %v1820_v43  ;;  %v1834_v24 = vsel %vm5083_vm9, %v1829_v3, %v1833_v11  ;;  %2398 = vst [vmem:[#allocation3 + $0xc] sm:$0x1] %v2397_v44  ;;  %4550 = vmatpush3.bf16.msra.mxu1 %v4752_v59  ;;  %vm2501_vm9 = vcmask 1044484   ;;  %vm2590_vm14 = vsmask.f32 5392  ;;  %vm2589_vm15 = vmor %vm2587_vm12, %vm2588_vm13 }
  0x8d   : > { %v4179_v45 = vcombine.low %v1834_v24, %v1848_v37  ;;  %4551 = vmatprep.subr.bf16.mxu1 %v4868_v29  ;;  %vm2591_vm1 = vmor %vm2589_vm15, %vm2590_vm14  ;;  %vm2872_vm4 = vcmask 1040384  }
  0x8e   : > { %4533 = vmatprep.mubr.msk.bf16.mxu1 %vm693_vm10, %v4178_v31 }
  0x90   : > { %4552 = vmatpush3.bf16.msra.mxu1 %v4754_v63 }
  0x91   : > { %4542 = vmatmul.mubr.msk.bf16.vlgmr.msra.gmra.mxu0 %vm693_vm10, %v4195_v17  ;;  %4553 = vmatprep.subr.bf16.mxu1 %v4868_v29 }
  0x92   : > { %4545 = vmatprep.mubr.msk.bf16.mxu0 %vm693_vm10, %v4196_v23  ;;  %4562 = vmatpush3.bf16.msra.mxu0 %v4749_v55 }
  0x93   : > { %4534 = vmatmul.mubr.msk.bf16.gmra.mxu1 %vm693_vm10, %v4179_v45  ;;  %4563 = vmatprep.subr.bf16.mxu0 %v4868_v29 }
  0x94   : > { %4557 = vmatprep.mubr.msk.bf16.mxu1 %vm4869_vm2, %v4868_v29  ;;  %4554 = vmatpush3.bf16.msra.mxu1 %v4758_v14 }
  0x95   : > { %4555 = vmatprep.subr.bf16.mxu1 %v4868_v29 }
  0x96   : > { %4564 = vmatpush3.bf16.msra.mxu0 %v4750_v33 }
  0x97   : > { %4565 = vmatprep.subr.bf16.mxu0 %v4868_v29 }
  0x98   : > { %4556 = vmatpush3.bf16.msra.mxu1 %v4760_v30 }
  0x99   : > { %4546 = vmatmul.mubr.msk.bf16.gmra.mxu0 %vm693_vm10, %v4197_v47  ;;  %4573 = vmatprep.subr.bf16.mxu1 %v4868_v29  ;;  %vm2521_vm10 = vsmask.f32 2306 }
  0x9a   : > { %4569 = vmatprep.mubr.msk.bf16.mxu0 %vm4869_vm2, %v4868_v29  ;;  %4566 = vmatpush3.bf16.msra.mxu0 %v4751_v62  ;;  %vm5613_vm11 = vmand %vm2383_vm0, %vm2521_vm10  ;;  %vm2592_vm0 = vsmask.f32 7448 }
  0x9b   : > { %4567 = vmatprep.subr.bf16.mxu0 %v4868_v29  ;;  %vm5654_vm3 = vmor %vm2591_vm1, %vm2592_vm0 }
  0x9e   : > { %4568 = vmatpush3.bf16.msra.mxu0 %v4753_v0 }
  0x9f   : > { %4585 = vmatprep.subr.bf16.mxu0 %v4868_v29 }
  0xfe   : > { %v5451_v6 = vpop.f32.mrf.mxu1 }
 0x100   : > { %v5453_v28 = vpop.f32.mrf.mxu1 }
 0x102   : > { %v5457_v34 = vpop.f32.mrf.mxu1 }
 0x104   : > { %v5465_v48 = vpop.f32.mrf.mxu1 }
 0x108   : > { %v5455_v49 = vpop.f32.mrf.mxu0 }
 0x10a   : > { %v5463_v25 = vpop.f32.mrf.mxu0 }
 0x10c   : > { %v5471_v51 = vpop.f32.mrf.mxu0 }
 0x10e   : > { %v5477_v20 = vpop.f32.mrf.mxu0 }
 0x111   : > { %v5488_v57 = vpop.f32.mrf.mxu0 }
 0x113   : > { %v5473_v52 = vpop.f32.mrf.mxu1  ;;  %v5507_v39 = vpop.f32.mrf.mxu0 }
 0x115   : > { %v5475_v53 = vpop.f32.mrf.mxu1  ;;  %v5514_v1 = vpop.f32.mrf.mxu0 }
 0x117   : > { %v5479_v54 = vpop.f32.mrf.mxu1  ;;  %v5518_v13 = vpop.f32.mrf.mxu0 }
 0x119   : > { %v5486_v56 = vpop.f32.mrf.mxu1 }
 0x11b   : > { %v4459_v58 = vpop.f32.mrf.mxu1 }
 0x11c   : > { %v858_v19 = vadd.f32 %v4459_v58, %v5451_v6 }
 0x11d   : > { %v849_v60 = vpop.f32.mrf.mxu1  ;;  %v4495_v21 = vpop.f32.mrf.mxu0 }
 0x11e   : > { %v850_v36 = vadd.f32 %v849_v60, %v5453_v28  ;;  %v1046_v2 = vadd.f32 %v5455_v49, %v858_v19 }
 0x11f   : > { %v4460_v40 = vpop.f32.mrf.mxu1  ;;  %v1383_v43 = vpop.f32.mrf.mxu0 }
 0x120   : > { %v861_v4 = vadd.f32 %v4460_v40, %v5457_v34  ;;  %v1044_v50 = vadd.f32 %v5463_v25, %v850_v36 }
 0x121   : > { %v852_v5 = vpop.f32.mrf.mxu1  ;;  %v4496_v61 = vpop.f32.mrf.mxu0 }
 0x122   : > { %v853_v41 = vadd.f32 %v852_v5, %v5465_v48  ;;  %v1047_v26 = vadd.f32 %v5471_v51, %v861_v4 }
 0x123   : > { %v4463_v9 = vpop.f32.mrf.mxu1  ;;  %v1386_v8 = vpop.f32.mrf.mxu0 }
 0x124   : > { %v874_v28 = vadd.f32 %v4463_v9, %v5473_v52  ;;  %v1045_v49 = vadd.f32 %v5477_v20, %v853_v41 }
 0x125   : > { %v865_v12 = vpop.f32.mrf.mxu1 }
 0x126   : > { %v866_v34 = vadd.f32 %v865_v12, %v5475_v53  ;;  %v1050_v51 = vadd.f32 %v5488_v57, %v874_v28 }
 0x127   : > { %v4464_v11 = vpop.f32.mrf.mxu1 }
 0x128   : > { %v877_v48 = vadd.f32 %v4464_v11, %v5479_v54  ;;  %v1048_v9 = vadd.f32 %v5507_v39, %v866_v34 }
 0x129   : > { %v868_v17 = vpop.f32.mrf.mxu1 }
 0x12a   : > { %v869_v5 = vadd.f32 %v868_v17, %v5486_v56  ;;  %v1051_v20 = vadd.f32 %v5514_v1, %v877_v48 }
 0x12b   : > { %v4483_v22 = vpop.f32.mrf.mxu1 }
 0x12c   : > { %v1175_v42 = vadd.f32 %v4483_v22, %v1046_v2  ;;  %v1049_v56 = vadd.f32 %v5518_v13, %v869_v5 }
 0x12d   : > { %v1142_v23 = vpop.f32.mrf.mxu1 }
 0x12e   : > { %v1173_v44 = vadd.f32 %v1142_v23, %v1044_v50  ;;  %v1416_v59 = vadd.f32 %v4495_v21, %v1175_v42 }
 0x12f   : > { %v4484_v3 = vpop.f32.mrf.mxu1 }
 0x130   : > { %v1176_v33 = vadd.f32 %v4484_v3, %v1047_v26  ;;  %v1414_v40 = vadd.f32 %v1383_v43, %v1173_v44  ;;  %v4870_v26 = vmov 1983009808  }
 0x131   : > { %v1145_v31 = vpop.f32.mrf.mxu1  ;;  %v2188_v28 = vunpack.c.l.s4 %v4870_v26 }
 0x132   : > { %v1174_v25 = vadd.f32 %v1145_v31, %v1045_v49  ;;  %v1417_v12 = vadd.f32 %v4496_v61, %v1176_v33 }
 0x133   : > { %v4487_v24 = vpop.f32.mrf.mxu1 }
 0x134   : > { %v1179_v14 = vadd.f32 %v4487_v24, %v1050_v51  ;;  %v1415_v23 = vadd.f32 %v1386_v8, %v1174_v25  ;;  %v5550_v8 = vld [vmem:[%s5943_s2] ss:$0 sm:$0xff] }
 0x135   : > { %v1158_v37 = vpop.f32.mrf.mxu1 }
 0x136   : > { %v1177_v11 = vadd.f32 %v1158_v37, %v1048_v9 }
 0x137   : > { %v4488_v10 = vpop.f32.mrf.mxu1 }
 0x138   : > { %v1180_v43 = vadd.f32 %v4488_v10, %v1051_v20 }
 0x139   : > { %v1161_v45 = vpop.f32.mrf.mxu1  ;;  %v4499_v47 = vpop.f32.mrf.mxu0 }
 0x13a   : > { %v1178_v39 = vadd.f32 %v1161_v45, %v1049_v56  ;;  %v1420_v19 = vadd.f32 %v4499_v47, %v1179_v14 }
 0x13b   : > { %v4507_v16 = vpop.f32.mrf.mxu1  ;;  %v1399_v27 = vpop.f32.mrf.mxu0 }
 0x13c   : > { %v1585_v63 = vadd.f32 %v4507_v16, %v1416_v59 }
 0x13d   : > { %v1552_v35 = vpop.f32.mrf.mxu1  ;;  %v4500_v32 = vpop.f32.mrf.mxu0 }
 0x13e   : > { %v1583_v53 = vadd.f32 %v1552_v35, %v1414_v40  ;;  %v1418_v35 = vadd.f32 %v1399_v27, %v1177_v11  ;;  %v1421_v37 = vadd.f32 %v4500_v32, %v1180_v43  ;;  %v5556_v27 = vld [vmem:[%s5944_s3] ss:$0 sm:$0xff] }
 0x13f   : > { %v4508_v7 = vpop.f32.mrf.mxu1  ;;  %v5531_v46 = vpop.f32.mrf.mxu0 }
 0x140   : > { %v1586_v22 = vadd.f32 %v4508_v7, %v1417_v12  ;;  %v1419_v47 = vadd.f32 %v5531_v46, %v1178_v39 }
 0x141   : > { %v1555_v38 = vpop.f32.mrf.mxu1  ;;  %v4519_v18 = vpop.f32.mrf.mxu0 }
 0x142   : > { %v1715_v30 = vadd.f32 %v4519_v18, %v1585_v63  ;;  %v1584_v3 = vadd.f32 %v1555_v38, %v1415_v23 }
 0x143   : > { %v1682_v15 = vpop.f32.mrf.mxu0  ;;  %v4511_v6 = vpop.f32.mrf.mxu1 }
 0x144   : > { %v1713_v16 = vadd.f32 %v1682_v15, %v1583_v53  ;;  %v1589_v4 = vadd.f32 %v4511_v6, %v1420_v19 }
 0x145   : > { %v4520_v55 = vpop.f32.mrf.mxu0  ;;  %v1568_v58 = vpop.f32.mrf.mxu1 }
 0x146   : > { %v1716_v36 = vadd.f32 %v4520_v55, %v1586_v22  ;;  %v1587_v10 = vadd.f32 %v1568_v58, %v1418_v35  ;;  %v2190_v55 = vlaneseq }
 0x147   : > { %v1685_v60 = vpop.f32.mrf.mxu0  ;;  %v4512_v62 = vpop.f32.mrf.mxu1 }
 0x148   : > { %v1714_v18 = vadd.f32 %v1685_v60, %v1584_v3  ;;  %v1590_v45 = vadd.f32 %v4512_v62, %v1421_v37  ;;  %v2191_v9 = vshrl.u32 %v2190_v55, 7 }
 0x149   : > { %v4523_v52 = vpop.f32.mrf.mxu0  ;;  %v1571_v0 = vpop.f32.mrf.mxu1 }
 0x14a   : > { %v1588_v6 = vadd.f32 %v1571_v0, %v1419_v47  ;;  %v1719_v58 = vadd.f32 %v4523_v52, %v1589_v4  ;;  %v2189_v52 = vunpack.c.0.s8 %v2188_v28 }
 0x14b   : > { %v1698_v21 = vpop.f32.mrf.mxu0  ;;  %v4531_v54 = vpop.f32.mrf.mxu1 }
 0x14c   : > { %v1956_v31 = vadd.f32 %v4531_v54, %v1715_v30  ;;  %v1717_v49 = vadd.f32 %v1698_v21, %v1587_v10  ;;  %v5567_v3 = vsub.s32 %v2189_v52, %v2191_v9 }
 0x14d   : > { %v4524_v17 = vpop.f32.mrf.mxu0  ;;  %v1923_v57 = vpop.f32.mrf.mxu1 }
 0x14e   : > { %v1954_v1 = vadd.f32 %v1923_v57, %v1713_v16  ;;  %v1720_v62 = vadd.f32 %v4524_v17, %v1590_v45 }
 0x14f   : > { %v1701_v61 = vpop.f32.mrf.mxu0  ;;  %v4532_v24 = vpop.f32.mrf.mxu1 }
 0x150   : > { %v1957_v38 = vadd.f32 %v4532_v24, %v1716_v36  ;;  %v1718_v21 = vadd.f32 %v1701_v61, %v1588_v6 }
 0x151   : > { %v4543_v7 = vpop.f32.mrf.mxu0  ;;  %v1926_v13 = vpop.f32.mrf.mxu1 }
 0x152   : > { %v2125_v2 = vadd.f32 %v4543_v7, %v1956_v31  ;;  %v1955_v50 = vadd.f32 %v1926_v13, %v1714_v18 }
 0x153   : > { %v2092_v41 = vpop.f32.mrf.mxu0  ;;  %v4535_v15 = vpop.f32.mrf.mxu1 }
 0x154   : > { %v2140_v32 = vmul.f32 %v5550_v8, %v2125_v2  ;;  %v2123_v42 = vadd.f32 %v2092_v41, %v1954_v1  ;;  %v1960_v60 = vadd.f32 %v4535_v15, %v1719_v58 }
 0x155   : > { %v4544_v44 = vpop.f32.mrf.mxu0  ;;  %v1939_v59 = vpop.f32.mrf.mxu1 }
 0x156   : > { %v2155_v34 = vadd.f32 %v5556_v27, %v2140_v32  ;;  %v2138_v46 = vmul.f32 %v5550_v8, %v2123_v42  ;;  %v2126_v33 = vadd.f32 %v4544_v44, %v1957_v38  ;;  %v1958_v5 = vadd.f32 %v1939_v59, %v1717_v49 }
 0x157   : > { %v2095_v48 = vpop.f32.mrf.mxu0  ;;  %v4536_v51 = vpop.f32.mrf.mxu1 }
 0x158   : > { %v2153_v25 = vadd.f32 %v5556_v27, %v2138_v46  ;;  %v2141_v63 = vmul.f32 %v5550_v8, %v2126_v33  ;;  %v2124_v40 = vadd.f32 %v2095_v48, %v1955_v50  ;;  %v2163_v0 = vmax.f32 %v2155_v34, 0.0 }
 0x159   : > { %v4547_v53 = vpop.f32.mrf.mxu0  ;;  %v1961_v20 = vadd.f32 %v4536_v51, %v1720_v62  ;;  %v1942_v54 = vpop.f32.mrf.mxu1 }
 0x15a   : > { %v2156_v12 = vadd.f32 %v5556_v27, %v2141_v63  ;;  %v2139_v14 = vmul.f32 %v5550_v8, %v2124_v40  ;;  %v2161_v11 = vmax.f32 %v2153_v25, 0.0  ;;  %v2129_v23 = vadd.f32 %v4547_v53, %v1960_v60 }
 0x15b   : > { %v2108_v22 = vpop.f32.mrf.mxu0  ;;  %v1959_v17 = vadd.f32 %v1942_v54, %v1718_v21  ;;  %v2173_v57 = vsel %vm2169_vm5, %v2163_v0, -inf }
 0x15c   : > { %v2164_v30 = vmax.f32 %v2156_v12, 0.0  ;;  %v2154_v43 = vadd.f32 %v5556_v27, %v2139_v14  ;;  %v2127_v56 = vadd.f32 %v2108_v22, %v1958_v5  ;;  %v2144_v31 = vmul.f32 %v5550_v8, %v2129_v23 }
 0x15d   : > { %v4548_v16 = vpop.f32.mrf.mxu0  ;;  %v2170_v35 = vsel %vm2169_vm5, %v2161_v11, -inf }
 0x15e   : > { %v2174_v39 = vsel %vm2169_vm5, %v2164_v30, -inf  ;;  %v2162_v19 = vmax.f32 %v2154_v43, 0.0  ;;  %v2142_v61 = vmul.f32 %v5550_v8, %v2127_v56  ;;  %v2130_v24 = vadd.f32 %v4548_v16, %v1961_v20 }
 0x15f   : > { %v2175_v1 = vmax.f32 %v2173_v57, %v2174_v39  ;;  %v5574_v36 = vadd.f32 %v5556_v27, %v2144_v31  ;;  %v2111_v4 = vpop.f32.mrf.mxu0 }
 0x160   : > { %v2171_v37 = vsel %vm2169_vm5, %v2162_v19, -inf  ;;  %v5578_v7 = vadd.f32 %v5556_v27, %v2142_v61  ;;  %v2145_v13 = vmul.f32 %v5550_v8, %v2130_v24  ;;  %v2128_v10 = vadd.f32 %v2111_v4, %v1959_v17 }
 0x161   : > { %v2203_v2 = vcombine.high %v2175_v1, %v2175_v1  ;;  %v2210_v38 = vrot.slane %v2175_v1, %v5567_v3  ;;  %v2172_v18 = vmax.f32 %v2170_v35, %v2171_v37  ;;  %v2167_v45 = vmax.f32 %v5574_v36, 0.0 }
 0x162   : > { %v2165_v47 = vmax.f32 %v5578_v7, 0.0  ;;  %v5588_v44 = vadd.f32 %v5556_v27, %v2145_v13  ;;  %v5591_v26 = vmul.f32 %v5550_v8, %v2128_v10 }
 0x163   : > { %v2217_v41 = vrot.slane %v2203_v2, %v5567_v3  ;;  %v2218_v32 = vcombine.high %v2210_v38, %v2210_v38  ;;  %v2299_v42 = vsel %vm2270_vm6, %v2210_v38, -inf  ;;  %v2186_v50 = vcombine.high %v2172_v18, %v2172_v18 }
 0x164   : > { %v2300_v15 = vrot.slane %v2299_v42, 4  ;;  %v2193_v6 = vrot.slane %v2172_v18, %v5567_v3  ;;  %v2176_v36 = vsel %vm2169_vm5, %v2165_v47, -inf }
 0x165   : > { %v2219_v28 = vcombine.high %v2217_v41, %v2217_v41  ;;  %v2306_v55 = vsel %vm2270_vm6, %v2218_v32, -inf  ;;  %v2313_v58 = vsel %vm2270_vm6, %v2217_v41, -inf  ;;  %v2200_v34 = vrot.slane %v2186_v50, %v5567_v3 }
 0x166   : > { %v2301_v46 = vmax.f32 %v2299_v42, %v2300_v15  ;;  %v2307_v33 = vrot.slane %v2306_v55, 4  ;;  %v2314_v49 = vrot.slane %v2313_v58, 4  ;;  %v2201_v59 = vcombine.high %v2193_v6, %v2193_v6 }
 0x167   : > { %v2320_v48 = vsel %vm2270_vm6, %v2219_v28, -inf  ;;  %v2202_v60 = vcombine.high %v2200_v34, %v2200_v34  ;;  %v2271_v62 = vsel %vm2270_vm6, %v2193_v6, -inf  ;;  %v2285_v25 = vsel %vm2270_vm6, %v2200_v34, -inf }
 0x168   : > { %v2302_v8 = vrot.slane %v2301_v46, 2  ;;  %v2308_v63 = vmax.f32 %v2306_v55, %v2307_v33  ;;  %v2315_v40 = vmax.f32 %v2313_v58, %v2314_v49  ;;  %v2321_v5 = vrot.slane %v2320_v48, 4 }
 0x169   : > { %v2272_v51 = vrot.slane %v2271_v62, 4  ;;  %v2278_v0 = vsel %vm2270_vm6, %v2201_v59, -inf  ;;  %v2286_v52 = vrot.slane %v2285_v25, 4  ;;  %v2292_v9 = vsel %vm2270_vm6, %v2202_v60, -inf }
 0x16a   : > { %v2303_v53 = vmax.f32 %v2301_v46, %v2302_v8  ;;  %v2309_v12 = vrot.slane %v2308_v63, 2  ;;  %v2316_v14 = vrot.slane %v2315_v40, 2  ;;  %v2322_v20 = vmax.f32 %v2320_v48, %v2321_v5 }
 0x16b   : > { %v2273_v21 = vmax.f32 %v2271_v62, %v2272_v51  ;;  %v2279_v54 = vrot.slane %v2278_v0, 4  ;;  %v2287_v11 = vmax.f32 %v2285_v25, %v2286_v52  ;;  %v2293_v22 = vrot.slane %v2292_v9, 4 }
 0x16c   : > { %v2304_v23 = vrot.slane %v2303_v53, 1  ;;  %v2310_v30 = vmax.f32 %v2308_v63, %v2309_v12  ;;  %v2317_v43 = vmax.f32 %v2315_v40, %v2316_v14  ;;  %v2323_v56 = vrot.slane %v2322_v20, 2  ;;  %v2526_v14 = vld [vmem:[#allocation3 + $0x8] sm:$0x7] }
 0x16d   : > { %v2274_v17 = vrot.slane %v2273_v21, 2  ;;  %v2280_v57 = vmax.f32 %v2278_v0, %v2279_v54  ;;  %v2288_v31 = vrot.slane %v2287_v11, 2  ;;  %v2294_v16 = vmax.f32 %v2292_v9, %v2293_v22 }
 0x16e   : > { %v2305_v39 = vmax.f32 %v2303_v53, %v2304_v23  ;;  %v2311_v19 = vrot.slane %v2310_v30, 1  ;;  %v2318_v61 = vrot.slane %v2317_v43, 1  ;;  %v2324_v24 = vmax.f32 %v2322_v20, %v2323_v56 }
 0x16f   : > { %v2275_v35 = vmax.f32 %v2273_v21, %v2274_v17  ;;  %v2281_v1 = vrot.slane %v2280_v57, 2  ;;  %v2289_v4 = vmax.f32 %v2287_v11, %v2288_v31  ;;  %v2295_v37 = vrot.slane %v2294_v16, 2 }
 0x170   : > { %v2312_v13 = vmax.f32 %v2310_v30, %v2311_v19  ;;  %v2319_v10 = vmax.f32 %v2317_v43, %v2318_v61  ;;  %v2325_v2 = vrot.slane %v2324_v24, 1  ;;  %v4321_v38 = vpack.c.bf16 %v2305_v39, %v2305_v39  ;;  %v2523_v39 = vld [vmem:[#allocation3 + $0x4] sm:$0x7] }
 0x171   : > { %v2276_v18 = vrot.slane %v2275_v35, 1  ;;  %v2282_v41 = vmax.f32 %v2280_v57, %v2281_v1  ;;  %v2290_v32 = vrot.slane %v2289_v4, 1  ;;  %v2296_v42 = vmax.f32 %v2294_v16, %v2295_v37 }
 0x172   : > { %v2326_v50 = vmax.f32 %v2324_v24, %v2325_v2  ;;  %v4322_v15 = vpack.c.bf16 %v2312_v13, %v2312_v13  ;;  %v4323_v6 = vpack.c.bf16 %v2319_v10, %v2319_v10  ;;  %v2485_v28 = vunpack.c.l.b16 %v4321_v38 }
 0x173   : > { %v2277_v55 = vmax.f32 %v2275_v35, %v2276_v18  ;;  %v2283_v58 = vrot.slane %v2282_v41, 1  ;;  %v2291_v34 = vmax.f32 %v2289_v4, %v2290_v32  ;;  %v2297_v46 = vrot.slane %v2296_v42, 1 }
 0x174   : > { %v4324_v33 = vpack.c.bf16 %v2326_v50, %v2326_v50  ;;  %v2486_v49 = vunpack.c.l.b16 %v4322_v15  ;;  %v2487_v59 = vunpack.c.l.b16 %v4323_v6  ;;  %v2168_v48 = vmax.f32 %v5588_v44, 0.0 }
 0x175   : > { %v2284_v60 = vmax.f32 %v2282_v41, %v2283_v58  ;;  %v2298_v62 = vmax.f32 %v2296_v42, %v2297_v46  ;;  %v4317_v25 = vpack.c.bf16 %v2277_v55, %v2277_v55  ;;  %v4319_v8 = vpack.c.bf16 %v2291_v34, %v2291_v34 }
 0x176   : > { %v2488_v63 = vunpack.c.l.b16 %v4324_v33  ;;  %v2503_v40 = vsel %vm2497_vm7, %v2486_v49, %v2485_v28  ;;  %v2180_v5 = vsel %vm2169_vm5, %v2168_v48, -inf  ;;  %v2158_v51 = vadd.f32 %v5556_v27, %v5591_v26 }
 0x177   : > { %v2504_v0 = vsel %vm2499_vm8, %v2487_v59, %v2503_v40  ;;  %v4318_v52 = vpack.c.bf16 %v2284_v60, %v2284_v60  ;;  %v4320_v9 = vpack.c.bf16 %v2298_v62, %v2298_v62  ;;  %v2179_v44 = vsel %vm2169_vm5, %v2167_v45, -inf }
 0x178   : > { %v2505_v53 = vsel %vm2501_vm9, %v2488_v63, %v2504_v0  ;;  %v2483_v20 = vunpack.c.l.b16 %v4319_v8  ;;  %v2181_v21 = vmax.f32 %v2179_v44, %v2180_v5  ;;  %v2166_v27 = vmax.f32 %v2158_v51, 0.0 }
 0x179   : > { %v2513_v26 = vpack.c.b16 %v2505_v53, %v2505_v53  ;;  %v2481_v54 = vunpack.c.l.b16 %v4317_v25  ;;  %v2482_v11 = vunpack.c.l.b16 %v4318_v52  ;;  %v2484_v22 = vunpack.c.l.b16 %v4320_v9 }
 0x17a   : > { %v2237_v45 = vcombine.high %v2181_v21, %v2181_v21  ;;  %v2244_v23 = vrot.slane %v2181_v21, %v5567_v3  ;;  %v2177_v30 = vsel %vm2169_vm5, %v2166_v27, -inf }
 0x17b   : > { %v2527_v43 = vsel %vm5613_vm11, %v2513_v26, %v2526_v14  ;;  %v2498_v56 = vsel %vm2497_vm7, %v2482_v11, %v2481_v54  ;;  %v2178_v17 = vmax.f32 %v2176_v36, %v2177_v30 }
 0x17c   : > { %2528 = vst [vmem:[#allocation3 + $0x8] sm:$0x7] %v2527_v43  ;;  %v2500_v57 = vsel %vm2499_vm8, %v2483_v20, %v2498_v56  ;;  %v2251_v31 = vrot.slane %v2237_v45, %v5567_v3  ;;  %v2252_v16 = vcombine.high %v2244_v23, %v2244_v23  ;;  %v2355_v7 = vsel %vm2270_vm6, %v2244_v23, -inf }
 0x17d   : > { %v2502_v47 = vsel %vm2501_vm9, %v2484_v22, %v2500_v57  ;;  %v2356_v19 = vrot.slane %v2355_v7, 4  ;;  %v2220_v61 = vcombine.high %v2178_v17, %v2178_v17  ;;  %v2227_v24 = vrot.slane %v2178_v17, %v5567_v3 }
 0x17e   : > { %v2512_v35 = vpack.c.b16 %v2502_v47, %v2502_v47  ;;  %v2253_v1 = vcombine.high %v2251_v31, %v2251_v31  ;;  %v2362_v4 = vsel %vm2270_vm6, %v2252_v16, -inf  ;;  %v2369_v37 = vsel %vm2270_vm6, %v2251_v31, -inf }
 0x17f   : > { %v2357_v13 = vmax.f32 %v2355_v7, %v2356_v19  ;;  %v2363_v10 = vrot.slane %v2362_v4, 4  ;;  %v2370_v2 = vrot.slane %v2369_v37, 4  ;;  %v2234_v38 = vrot.slane %v2220_v61, %v5567_v3 }
 0x180   : > { %v2524_v18 = vsel %vm5613_vm11, %v2512_v35, %v2523_v39  ;;  %v2376_v41 = vsel %vm2270_vm6, %v2253_v1, -inf  ;;  %v2235_v32 = vcombine.high %v2227_v24, %v2227_v24  ;;  %v2327_v42 = vsel %vm2270_vm6, %v2227_v24, -inf }
 0x181   : > { %2525 = vst [vmem:[#allocation3 + $0x4] sm:$0x7] %v2524_v18  ;;  %v2358_v50 = vrot.slane %v2357_v13, 2  ;;  %v2364_v15 = vmax.f32 %v2362_v4, %v2363_v10  ;;  %v2371_v6 = vmax.f32 %v2369_v37, %v2370_v2  ;;  %v2377_v28 = vrot.slane %v2376_v41, 4 }
 0x182   : > { %v2236_v55 = vcombine.high %v2234_v38, %v2234_v38  ;;  %v2328_v58 = vrot.slane %v2327_v42, 4  ;;  %v2334_v34 = vsel %vm2270_vm6, %v2235_v32, -inf  ;;  %v2341_v46 = vsel %vm2270_vm6, %v2234_v38, -inf }
 0x183   : > { %v2359_v33 = vmax.f32 %v2357_v13, %v2358_v50  ;;  %v2365_v49 = vrot.slane %v2364_v15, 2  ;;  %v2372_v59 = vrot.slane %v2371_v6, 2  ;;  %v2378_v48 = vmax.f32 %v2376_v41, %v2377_v28 }
 0x184   : > { %v2329_v60 = vmax.f32 %v2327_v42, %v2328_v58  ;;  %v2335_v62 = vrot.slane %v2334_v34, 4  ;;  %v2342_v25 = vrot.slane %v2341_v46, 4  ;;  %v2348_v8 = vsel %vm2270_vm6, %v2236_v55, -inf  ;;  %vm2874_vm6 = vmor %vm2872_vm4, %vm2497_vm7 }
 0x185   : > { %v2360_v63 = vrot.slane %v2359_v33, 1  ;;  %v2366_v40 = vmax.f32 %v2364_v15, %v2365_v49  ;;  %v2373_v5 = vmax.f32 %v2371_v6, %v2372_v59  ;;  %v2379_v51 = vrot.slane %v2378_v48, 2  ;;  %v2532_v15 = vld [vmem:[#allocation3 + $0x10] sm:$0x7] }
 0x186   : > { %v2330_v0 = vrot.slane %v2329_v60, 2  ;;  %v2336_v52 = vmax.f32 %v2334_v34, %v2335_v62  ;;  %v2343_v9 = vmax.f32 %v2341_v46, %v2342_v25  ;;  %v2349_v44 = vrot.slane %v2348_v8, 4  ;;  %v4222_v46 = vld.sshfl [vmem:[#allocation3] sm:$0x13 pattern:$0x76325410] }
 0x187   : > { %v2361_v53 = vmax.f32 %v2359_v33, %v2360_v63  ;;  %v2367_v14 = vrot.slane %v2366_v40, 1  ;;  %v2374_v20 = vrot.slane %v2373_v5, 1  ;;  %v2380_v21 = vmax.f32 %v2378_v48, %v2379_v51  ;;  %v2529_v63 = vld [vmem:[#allocation3 + $0xc] sm:$0x7] }
 0x188   : > { %v2331_v27 = vmax.f32 %v2329_v60, %v2330_v0  ;;  %v2337_v26 = vrot.slane %v2336_v52, 2  ;;  %v2344_v54 = vrot.slane %v2343_v9, 2  ;;  %v2350_v11 = vmax.f32 %v2348_v8, %v2349_v44  ;;  %v4223_v33 = vld.sshfl [vmem:[#allocation3 + $0x4] sm:$0x13 pattern:$0x76325410] }
 0x189   : > { %v2368_v22 = vmax.f32 %v2366_v40, %v2367_v14  ;;  %v2375_v36 = vmax.f32 %v2373_v5, %v2374_v20  ;;  %v2381_v45 = vrot.slane %v2380_v21, 1  ;;  %v4329_v23 = vpack.c.bf16 %v2361_v53, %v2361_v53  ;;  %v4224_v0 = vld.sshfl [vmem:[#allocation3 + $0x8] sm:$0x13 pattern:$0x76325410] }
 0x18a   : > { %v2332_v30 = vrot.slane %v2331_v27, 1  ;;  %v2338_v43 = vmax.f32 %v2336_v52, %v2337_v26  ;;  %v2345_v56 = vmax.f32 %v2343_v9, %v2344_v54  ;;  %v2351_v17 = vrot.slane %v2350_v11, 2 }
 0x18b   : > { %v2382_v57 = vmax.f32 %v2380_v21, %v2381_v45  ;;  %v4330_v31 = vpack.c.bf16 %v2368_v22, %v2368_v22  ;;  %v4331_v16 = vpack.c.bf16 %v2375_v36, %v2375_v36  ;;  %v2493_v24 = vunpack.c.l.b16 %v4329_v23 }
 0x18c   : > { %v2333_v7 = vmax.f32 %v2331_v27, %v2332_v30  ;;  %v2339_v47 = vrot.slane %v2338_v43, 1  ;;  %v2346_v39 = vrot.slane %v2345_v56, 1  ;;  %v2352_v19 = vmax.f32 %v2350_v11, %v2351_v17  ;;  %v4799_v11 = vld.sshfl [vmem:[#allocation3] sm:$0xf pattern:$0x76325410] }
 0x18d   : > { %v4332_v61 = vpack.c.bf16 %v2382_v57, %v2382_v57  ;;  %v2494_v35 = vunpack.c.l.b16 %v4330_v31  ;;  %v2495_v1 = vunpack.c.l.b16 %v4331_v16  ;;  %v2595_v62 = vshrl.u32 %v4222_v46, 16 }
 0x18e   : > { %v2340_v4 = vmax.f32 %v2338_v43, %v2339_v47  ;;  %v2347_v37 = vmax.f32 %v2345_v56, %v2346_v39  ;;  %v2353_v13 = vrot.slane %v2352_v19, 1  ;;  %v4325_v10 = vpack.c.bf16 %v2333_v7, %v2333_v7 }
 0x18f   : > { %v2496_v2 = vunpack.c.l.b16 %v4332_v61  ;;  %v2509_v38 = vsel %vm2497_vm7, %v2494_v35, %v2493_v24  ;;  %v2598_v25 = vshll.u32 %v4222_v46, 16  ;;  %v2609_v40 = vshrl.u32 %v4223_v33, 16 }
 0x190   : > { %v2510_v18 = vsel %vm2499_vm8, %v2495_v1, %v2509_v38  ;;  %v2354_v41 = vmax.f32 %v2352_v19, %v2353_v13  ;;  %v4326_v32 = vpack.c.bf16 %v2340_v4, %v2340_v4  ;;  %v4327_v42 = vpack.c.bf16 %v2347_v37, %v2347_v37  ;;  %v4757_v19 = vld [vmem:[%s5945_s4 + $0x78] sm:$0xff]   ;;  %v4782_v13 = vld [vmem:[%s5945_s4 + $0xd0] sm:$0xff]  }
 0x191   : > { %v2511_v50 = vsel %vm2501_vm9, %v2496_v2, %v2510_v18  ;;  %v2489_v6 = vunpack.c.l.b16 %v4325_v10  ;;  %v2612_v5 = vshll.u32 %v4223_v33, 16  ;;  %v2562_v52 = vcombine.high %v4222_v46, %v4222_v46  ;;  %v4761_v46 = vld [vmem:[%s5945_s4 + $0x68] sm:$0xff]  }
 0x192   : > { %v2515_v28 = vpack.c.b16 %v2511_v50, %v2511_v50  ;;  %v4328_v55 = vpack.c.bf16 %v2354_v41, %v2354_v41  ;;  %v2490_v58 = vunpack.c.l.b16 %v4326_v32  ;;  %v2491_v34 = vunpack.c.l.b16 %v4327_v42  ;;  %v4759_v41 = vld [vmem:[%s5945_s4 + $0x70] sm:$0xff]  }
 0x193   : > { %v2597_v44 = vrot.slane %v2595_v62, 6  ;;  %v2600_v53 = vrot.slane %v2598_v25, 7  ;;  %v2611_v14 = vrot.slane %v2609_v40, 6  ;;  %v2614_v20 = vrot.slane %v2612_v5, 7 }
 0x194   : > { %v2533_v49 = vsel %vm5613_vm11, %v2515_v28, %v2532_v15  ;;  %v2492_v59 = vunpack.c.l.b16 %v4328_v55  ;;  %v2506_v48 = vsel %vm2497_vm7, %v2490_v58, %v2489_v6  ;;  %v2623_v21 = vshrl.u32 %v4224_v0, 16  ;;  %v4236_v15 = vld.sshfl [vmem:[#allocation3] sm:$0x12 pattern:$0x76325410]  ;;  %vm2876_vm7 = vmor %vm2874_vm6, %vm2501_vm9 }
 0x195   : > { %2534 = vst [vmem:[#allocation3 + $0x10] sm:$0x7] %v2533_v49  ;;  %v2507_v60 = vsel %vm2499_vm8, %v2491_v34, %v2506_v48  ;;  %v2626_v27 = vshll.u32 %v4224_v0, 16  ;;  %v2570_v26 = vcombine.high %v4223_v33, %v4223_v33  ;;  %v2604_v54 = vshll.u32 %v2562_v52, 16 }
 0x196   : > { %v2508_v8 = vsel %vm2501_vm9, %v2492_v59, %v2507_v60  ;;  %v2601_v22 = vor.u32 %v2600_v53, %v2597_v44  ;;  %v2615_v36 = vor.u32 %v2614_v20, %v2611_v14  ;;  %v2625_v45 = vrot.slane %v2623_v21, 6  ;;  %v4238_v34 = vld.sshfl [vmem:[#allocation3 + $0x8] sm:$0x12 pattern:$0x76325410]  ;;  %v4764_v14 = vld [vmem:[%s5945_s4 + $0x50] sm:$0xff]  }
 0x197   : > { %v2514_v51 = vpack.c.b16 %v2508_v8, %v2508_v8  ;;  %v2628_v23 = vrot.slane %v2626_v27, 7  ;;  %v2578_v30 = vcombine.high %v4224_v0, %v4224_v0  ;;  %v2606_v12 = vrot.slane %v2604_v54, 7  ;;  %v4237_v49 = vld.sshfl [vmem:[#allocation3 + $0x4] sm:$0x12 pattern:$0x76325410] }
 0x198   : > { %v2618_v43 = vshll.u32 %v2570_v26, 16  ;;  %v2602_v57 = vrot.slane %v2601_v22, 2  ;;  %v2616_v31 = vrot.slane %v2615_v36, 2  ;;  %v2847_v25 = vcombine.high %v4236_v15, %v4236_v15  ;;  %v4762_v8 = vld [vmem:[%s5945_s4 + $0x58] sm:$0xff]   ;;  %v4763_v0 = vld [vmem:[%s5945_s4 + $0x60] sm:$0xff]  }
 0x199   : > { %v2530_v9 = vsel %vm5613_vm11, %v2514_v51, %v2529_v63  ;;  %v2629_v16 = vor.u32 %v2628_v23, %v2625_v45  ;;  %v2632_v24 = vshll.u32 %v2578_v30, 16  ;;  %v4802_v63 = vld.sshfl [vmem:[#allocation3 + $0x4] sm:$0xf pattern:$0x76325410]  ;;  %v2855_v40 = vcombine.high %v4237_v49, %v4237_v49 }
 0x19a   : > { %2531 = vst [vmem:[#allocation3 + $0xc] sm:$0x7] %v2530_v9  ;;  %v2620_v61 = vrot.slane %v2618_v43, 7  ;;  %v2607_v10 = vsel %vm5654_vm3, %v2602_v57, %v2606_v12  ;;  %v2863_v5 = vcombine.high %v4238_v34, %v4238_v34  ;;  %vm2877_vm8 = vcmask 1046534   ;;  %v4767_v54 = vld [vmem:[%s5945_s4 + $0xb8] sm:$0xff]   ;;  %v4768_v43 = vld [vmem:[%s5945_s4 + $0x48] sm:$0xff]  }
 0x19b   : > { %v2630_v38 = vrot.slane %v2629_v16, 2  ;;  %v2634_v32 = vrot.slane %v2632_v24, 7  ;;  %v4240_v44 = vrot.slane %v4236_v15, 9  ;;  %v2881_v53 = vrot.slane %v2847_v25, 7  ;;  %vm5706_vm9 = vmor %vm2876_vm7, %vm2877_vm8  ;;  %v4769_v16 = vld [vmem:[%s5945_s4 + $0xb0] sm:$0xff]   ;;  %v4770_v24 = vld [vmem:[%s5945_s4 + $0x40] sm:$0xff]  }
 0x19c   : > { %v5663_v2 = vsel %vm5654_vm3, %v2616_v31, %v2620_v61  ;;  %v4266_v9 = vld.sshfl [vmem:[#allocation3 + $0x10] sm:$0x12 pattern:$0x76325410]  ;;  %v2885_v20 = vrot.slane %v2855_v40, 7  ;;  %v2889_v21 = vrot.slane %v2863_v5, 7 }
 0x19d   : > { %v2658_v6 = vcombine.low %v2607_v10, %v5663_v2  ;;  %v5674_v55 = vsel %vm5654_vm3, %v2630_v38, %v2634_v32  ;;  %v4257_v22 = vld.sshfl [vmem:[#allocation3 + $0x10] sm:$0x13 pattern:$0x76325410]  ;;  %v4241_v45 = vrot.slane %v4237_v49, 9  ;;  %v4242_v23 = vrot.slane %v4238_v34, 9 }
 0x19e   : > { %v2882_v12 = vsel %vm5706_vm9, %v4240_v44, %v2881_v53  ;;  %v3176_v57 = vshrl.u32 %v4257_v22, 16  ;;  %v3179_v31 = vshll.u32 %v4257_v22, 16  ;;  %v4270_v61 = vrot.slane %v4266_v9, 9  ;;  %v4773_v34 = vld [vmem:[%s5945_s4 + $0xa0] sm:$0xff]   ;;  %v4777_v44 = vld [vmem:[%s5945_s4 + $0xf0] sm:$0xff]   ;;  %v4791_v26 = vld [vmem:[%s5948_s7 + $0x38] sm:$0xff]  }
 0x19f   : > { %v2666_v60 = vrot.slane %v2658_v6, %v5567_v3  ;;  %v3132_v32 = vcombine.high %v4257_v22, %v4257_v22 }
 0x1a1   : > { %v4800_v56 = vld.sshfl [vmem:[#allocation3 + $0x8] sm:$0xf pattern:$0x76325410] }
 0x1a2   : > { %v4225_v17 = vld.sshfl [vmem:[#allocation3 + $0xc] sm:$0x13 pattern:$0x76325410]  ;;  %v2763_v35 = vcombine.low %v4799_v11, %v4800_v56  ;;  %v3323_v11 = vcombine.high %v4266_v9, %v4266_v9  ;;  %v2886_v56 = vsel %vm5706_vm9, %v4241_v45, %v2885_v20  ;;  %v4781_v45 = vld [vmem:[%s5945_s4 + $0xe0] sm:$0xff]  }
 0x1a3   : > { %v2586_v7 = vcombine.high %v4225_v17, %v4225_v17  ;;  %v2637_v47 = vshrl.u32 %v4225_v17, 16  ;;  %v2640_v39 = vshll.u32 %v4225_v17, 16  ;;  %v4239_v28 = vld.sshfl [vmem:[#allocation3 + $0xc] sm:$0x12 pattern:$0x76325410]  ;;  %v2890_v17 = vsel %vm5706_vm9, %v4242_v23, %v2889_v21 }
 0x1a4   : > { %4570 = vmatmul.mubr.msk.bf16.vlgmr.msra.gmra.mxu0 %vm2169_vm5, %v2763_v35  ;;  %v4801_v59 = vld.sshfl [vmem:[#allocation3 + $0xc] sm:$0xf pattern:$0x76325410]  ;;  %v2871_v48 = vcombine.high %v4239_v28, %v4239_v28  ;;  %v4243_v27 = vrot.slane %v4239_v28, 9  ;;  %v3178_v35 = vrot.slane %v3176_v57, 6  ;;  %v3348_v15 = vcombine.low %v2886_v56, %v2890_v17 }
 0x1a5   : > { %v2639_v1 = vrot.slane %v2637_v47, 6  ;;  %v2642_v4 = vrot.slane %v2640_v39, 7  ;;  %v2646_v37 = vshll.u32 %v2586_v7, 16  ;;  %4586 = vmatpush3.bf16.msra.mxu0 %v4757_v19  ;;  %4593 = vmatprep.mubr.msk.bf16.mxu0 %vm4869_vm2, %v4868_v29  ;;  %v3022_v36 = vcombine.low %v4802_v63, %v4801_v59  ;;  %v4775_v63 = vld [vmem:[%s5945_s4 + $0xf8] sm:$0xff]  }
 0x1a6   : > { %4587 = vmatprep.subr.bf16.mxu0 %v4868_v29  ;;  %v2893_v52 = vrot.slane %v2871_v48, 7  ;;  %v3338_v47 = vrot.slane %v3323_v11, 7  ;;  %v4284_v39 = vld.sshfl [vmem:[#allocation3 + $0x14] sm:$0x13 pattern:$0x76325410]  ;;  %v2903_v19 = vcombine.low %v2882_v12, %v2886_v56  ;;  %v3356_v25 = vrot.slane %v3348_v15, %v5567_v3 }
 0x1a7   : > { %v2643_v18 = vor.u32 %v2642_v4, %v2639_v1  ;;  %v2648_v50 = vrot.slane %v2646_v37, 7  ;;  %v3181_v1 = vrot.slane %v3179_v31, 7  ;;  %v4771_v37 = vld [vmem:[%s5945_s4 + $0xa8] sm:$0xff]   ;;  %v3622_v38 = vshrl.u32 %v4284_v39, 16  ;;  %v4787_v57 = vld [vmem:[%s5945_s4 + $0x118] sm:$0xff]  }
 0x1a8   : > { %v2894_v30 = vsel %vm5706_vm9, %v4243_v27, %v2893_v52  ;;  %v5746_v10 = vsel %vm5706_vm9, %v4270_v61, %v3338_v47  ;;  %v3185_v48 = vshll.u32 %v3132_v32, 16  ;;  %v4776_v52 = vld [vmem:[%s5945_s4 + $0x88] sm:$0xff]   ;;  %v3197_v21 = vcombine.low %v5663_v2, %v5674_v55  ;;  %v4778_v27 = vld [vmem:[%s5945_s4 + $0x80] sm:$0xff]  }
 0x1a9   : > { %v2644_v42 = vrot.slane %v2643_v18, 2  ;;  %4588 = vmatpush3.bf16.msra.mxu0 %v4759_v41  ;;  %v2904_v7 = vcombine.low %v2890_v17, %v2894_v30  ;;  %v3625_v18 = vshll.u32 %v4284_v39, 16  ;;  %v3349_v41 = vcombine.low %v2894_v30, %v5746_v10  ;;  %v4783_v12 = vld [vmem:[%s5945_s4 + $0xc8] sm:$0xff]   ;;  %v4798_v32 = vld [vmem:[%s5948_s7] sm:$0xff]  }
 0x1aa   : > { %4589 = vmatprep.subr.bf16.mxu0 %v4868_v29  ;;  %v3182_v6 = vor.u32 %v3181_v1, %v3178_v35  ;;  %v3205_v2 = vrot.slane %v3197_v21, %v5567_v3  ;;  %v4804_v56 = vld.sshfl [vmem:[#allocation3 + $0x10] sm:$0xf pattern:$0x76325410] }
 0x1ab   : > { %v5678_v58 = vsel %vm5654_vm3, %v2644_v42, %v2648_v50  ;;  %v5739_v4 = vrot.slane %v2904_v7, %v5567_v3  ;;  %v2911_v42 = vrot.slane %v2903_v19, %v5567_v3  ;;  %v4772_v50 = vld [vmem:[%s5945_s4 + $0x98] sm:$0xff]   ;;  %v3627_v49 = vrot.slane %v3625_v18, 7  ;;  %v4293_v17 = vld.sshfl [vmem:[#allocation3 + $0x14] sm:$0x12 pattern:$0x76325410] }
 0x1ac   : > { %v2659_v33 = vcombine.low %v5674_v55, %v5678_v58  ;;  %v3363_v59 = vrot.slane %v3349_v41, %v5567_v3  ;;  %v4780_v55 = vld [vmem:[%s5945_s4 + $0xd8] sm:$0xff]   ;;  %v3769_v31 = vcombine.high %v4293_v17, %v4293_v17  ;;  %v4788_v7 = vld [vmem:[%s5945_s4 + $0x110] sm:$0xff]   ;;  %v4297_v47 = vrot.slane %v4293_v17, 9  ;;  %v4789_v19 = vld [vmem:[%s5945_s4 + $0x108] sm:$0xff]  }
 0x1ad   : > { %4590 = vmatpush3.bf16.msra.mxu0 %v4761_v46  ;;  %v2919_v28 = vcombine.low %v2911_v42, %v5739_v4  ;;  %v3578_v46 = vcombine.high %v4284_v39, %v4284_v39  ;;  %v4790_v35 = vld [vmem:[%s5945_s4 + $0x100] sm:$0xff]   ;;  %v4796_v18 = vld [vmem:[%s5948_s7 + $0x10] sm:$0xff]   ;;  %v4797_v41 = vld [vmem:[%s5948_s7 + $0x8] sm:$0xff]  }
 0x1ae   : > { %v5689_v62 = vrot.slane %v2659_v33, %v5567_v3  ;;  %4591 = vmatprep.subr.bf16.mxu0 %v4868_v29  ;;  %v3624_v33 = vrot.slane %v3622_v38, 6  ;;  %v3784_v39 = vrot.slane %v3769_v31, 7  ;;  %v4795_v38 = vld [vmem:[%s5948_s7 + $0x18] sm:$0xff]  }
 0x1af   : > { %v3631_v5 = vshll.u32 %v3578_v46, 16 }
 0x1b0   : > { %v2674_v51 = vcombine.low %v2666_v60, %v5689_v62  ;;  %v4774_v60 = vld [vmem:[%s5945_s4 + $0x90] sm:$0xff]   ;;  %v3628_v40 = vor.u32 %v3627_v49, %v3624_v33  ;;  %v3785_v61 = vsel %vm5706_vm9, %v4297_v47, %v3784_v39 }
 0x1b1   : > { %4592 = vmatpush3.bf16.msra.mxu0 %v4763_v0  ;;  %v3187_v0 = vrot.slane %v3185_v48, 7  ;;  %v3633_v20 = vrot.slane %v3631_v5, 7 }
 0x1b2   : > { %4558 = vmatmul.mubr.msk.bf16.vlgmr.msra.gmra.mxu1 %vm2169_vm5, %v2674_v51  ;;  %4609 = vmatprep.subr.bf16.mxu0 %v4868_v29  ;;  %v3364_v51 = vcombine.low %v3356_v25, %v3363_v59 }
 0x1b3   : > { %4574 = vmatpush3.bf16.msra.mxu1 %v4762_v8  ;;  %4581 = vmatprep.mubr.msk.bf16.mxu1 %vm4869_vm2, %v4868_v29  ;;  %v3183_v8 = vrot.slane %v3182_v6, 2 }
 0x1b4   : > { %4575 = vmatprep.subr.bf16.mxu1 %v4868_v29  ;;  %4594 = vmatmul.mubr.msk.bf16.vlgmr.msra.gmra.mxu0 %vm2169_vm5, %v3022_v36 }
 0x1b5   : > { %4610 = vmatpush3.bf16.msra.mxu0 %v4767_v54  ;;  %4617 = vmatprep.mubr.msk.bf16.mxu0 %vm4869_vm2, %v4868_v29  ;;  %v3188_v9 = vsel %vm5654_vm3, %v3183_v8, %v3187_v0  ;;  %v4779_v54 = vld [vmem:[%s5945_s4 + $0xe8] sm:$0xff]  }
 0x1b6   : > { %4611 = vmatprep.subr.bf16.mxu0 %v4868_v29  ;;  %v3198_v53 = vcombine.low %v5678_v58, %v3188_v9 }
 0x1b7   : > { %4576 = vmatpush3.bf16.msra.mxu1 %v4764_v14  ;;  %v3629_v14 = vrot.slane %v3628_v40, 2 }
 0x1b8   : > { %4577 = vmatprep.subr.bf16.mxu1 %v4868_v29  ;;  %v3212_v58 = vrot.slane %v3198_v53, %v5567_v3 }
 0x1b9   : > { %4612 = vmatpush3.bf16.msra.mxu0 %v4769_v16  ;;  %v3634_v11 = vsel %vm5654_vm3, %v3629_v14, %v3633_v20 }
 0x1ba   : > { %4613 = vmatprep.subr.bf16.mxu0 %v4868_v29  ;;  %v3644_v22 = vcombine.low %v3188_v9, %v3634_v11  ;;  %v3213_v36 = vcombine.low %v3205_v2, %v3212_v58 }
 0x1bb   : > { %4578 = vmatpush3.bf16.msra.mxu1 %v4768_v43  ;;  %v4803_v43 = vld.sshfl [vmem:[#allocation3 + $0x8] sm:$0xf pattern:$0x76325410] }
 0x1bc   : > { %4579 = vmatprep.subr.bf16.mxu1 %v4868_v29  ;;  %v3658_v23 = vrot.slane %v3644_v22, %v5567_v3  ;;  %v3468_v16 = vcombine.low %v4803_v43, %v4804_v56 }
 0x1bd   : > { %4614 = vmatpush3.bf16.msra.mxu0 %v4771_v37 }
 0x1be   : > { %4615 = vmatprep.subr.bf16.mxu0 %v4868_v29  ;;  %v3659_v30 = vcombine.low %v5689_v62, %v3658_v23  ;;  %v4784_v62 = vld [vmem:[%s5945_s4 + $0xc0] sm:$0xff]  }
 0x1bf   : > { %4580 = vmatpush3.bf16.msra.mxu1 %v4770_v24  ;;  %v3795_v24 = vcombine.low %v5746_v10, %v3785_v61  ;;  %v4792_v10 = vld [vmem:[%s5948_s7 + $0x30] sm:$0xff]   ;;  %v4304_v61 = vld [vmem:[%s5947_s6] ss:$0 sm:$0xff] }
 0x1c0   : > { %4597 = vmatprep.subr.bf16.mxu1 %v4868_v29 }
 0x1c1   : > { %4616 = vmatpush3.bf16.msra.mxu0 %v4773_v34  ;;  %v3809_v1 = vrot.slane %v3795_v24, %v5567_v3  ;;  %v4793_v3 = vld [vmem:[%s5948_s7 + $0x28] sm:$0xff]  }
 0x1c2   : > { %4582 = vmatmul.mubr.msk.bf16.vlgmr.msra.gmra.mxu1 %vm2169_vm5, %v2919_v28  ;;  %4633 = vmatprep.subr.bf16.mxu0 %v4868_v29 }
 0x1c3   : > { %4598 = vmatpush3.bf16.msra.mxu1 %v4772_v50  ;;  %4605 = vmatprep.mubr.msk.bf16.mxu1 %vm4869_vm2, %v4868_v29  ;;  %v3810_v37 = vcombine.low %v5739_v4, %v3809_v1  ;;  %v4794_v4 = vld [vmem:[%s5948_s7 + $0x20] sm:$0xff]  }
 0x1c4   : > { %4599 = vmatprep.subr.bf16.mxu1 %v4868_v29  ;;  %4618 = vmatmul.mubr.msk.bf16.vlgmr.msra.gmra.mxu0 %vm2169_vm5, %v3364_v51 }
 0x1c5   : > { %4634 = vmatpush3.bf16.msra.mxu0 %v4775_v63  ;;  %4641 = vmatprep.mubr.msk.bf16.mxu0 %vm4869_vm2, %v4868_v29 }
 0x1c6   : > { %4635 = vmatprep.subr.bf16.mxu0 %v4868_v29 }
 0x1c7   : > { %4600 = vmatpush3.bf16.msra.mxu1 %v4774_v60 }
 0x1c8   : > { %4601 = vmatprep.subr.bf16.mxu1 %v4868_v29 }
 0x1c9   : > { %4636 = vmatpush3.bf16.msra.mxu0 %v4777_v44 }
 0x1ca   : > { %4637 = vmatprep.subr.bf16.mxu0 %v4868_v29 }
 0x1cb   : > { %4602 = vmatpush3.bf16.msra.mxu1 %v4776_v52 }
 0x1cc   : > { %4603 = vmatprep.subr.bf16.mxu1 %v4868_v29 }
 0x1cd   : > { %4638 = vmatpush3.bf16.msra.mxu0 %v4779_v54 }
 0x1ce   : > { %4639 = vmatprep.subr.bf16.mxu0 %v4868_v29 }
 0x1cf   : > { %4604 = vmatpush3.bf16.msra.mxu1 %v4778_v27 }
 0x1d0   : > { %4621 = vmatprep.subr.bf16.mxu1 %v4868_v29 }
 0x1d1   : > { %4640 = vmatpush3.bf16.msra.mxu0 %v4781_v45 }
 0x1d2   : > { %4606 = vmatmul.mubr.msk.bf16.vlgmr.msra.gmra.mxu1 %vm2169_vm5, %v3213_v36  ;;  %4657 = vmatprep.subr.bf16.mxu0 %v4868_v29 }
 0x1d3   : > { %4622 = vmatpush3.bf16.msra.mxu1 %v4780_v55  ;;  %4629 = vmatprep.mubr.msk.bf16.mxu1 %vm4869_vm2, %v4868_v29 }
 0x1d4   : > { %4623 = vmatprep.subr.bf16.mxu1 %v4868_v29  ;;  %4642 = vmatmul.mubr.msk.bf16.vlgmr.msra.gmra.mxu0 %vm2169_vm5, %v3659_v30 }
 0x1d5   : > { %4673 = vmatprep.mubr.msk.bf16.mxu0 %vm4869_vm2, %v4868_v29  ;;  %4658 = vmatpush3.bf16.msra.mxu0 %v4791_v26 }
 0x1d6   : > { %4659 = vmatprep.subr.bf16.mxu0 %v4868_v29 }
 0x1d7   : > { %4624 = vmatpush3.bf16.msra.mxu1 %v4782_v13 }
 0x1d8   : > { %4625 = vmatprep.subr.bf16.mxu1 %v4868_v29 }
 0x1d9   : > { %4660 = vmatpush3.bf16.msra.mxu0 %v4792_v10 }
 0x1da   : > { %4661 = vmatprep.subr.bf16.mxu0 %v4868_v29 }
 0x1db   : > { %4626 = vmatpush3.bf16.msra.mxu1 %v4783_v12 }
 0x1dc   : > { %4627 = vmatprep.subr.bf16.mxu1 %v4868_v29 }
 0x1dd   : > { %4662 = vmatpush3.bf16.msra.mxu0 %v4793_v3 }
 0x1de   : > { %4663 = vmatprep.subr.bf16.mxu0 %v4868_v29 }
 0x1df   : > { %4628 = vmatpush3.bf16.msra.mxu1 %v4784_v62 }
 0x1e0   : > { %4645 = vmatprep.subr.bf16.mxu1 %v4868_v29 }
 0x1e1   : > { %4664 = vmatpush3.bf16.msra.mxu0 %v4794_v4 }
 0x1e2   : > { %4630 = vmatmul.mubr.msk.bf16.vlgmr.msra.gmra.mxu1 %vm2169_vm5, %v3468_v16  ;;  %4665 = vmatprep.subr.bf16.mxu0 %v4868_v29  ;;  %v4303_v16 = vld [vmem:[%s5946_s5] ss:$0 sm:$0xff] }
 0x1e3   : > { %4646 = vmatpush3.bf16.msra.mxu1 %v4787_v57  ;;  %4653 = vmatprep.mubr.msk.bf16.mxu1 %vm4869_vm2, %v4868_v29  ;;  %vm4014_vm2 = vcmask 73728  }
 0x1e4   : > { %4647 = vmatprep.subr.bf16.mxu1 %v4868_v29 }
 0x1e5   : > { %4666 = vmatpush3.bf16.msra.mxu0 %v4795_v38 }
 0x1e6   : > { %4667 = vmatprep.subr.bf16.mxu0 %v4868_v29 }
 0x1e7   : > { %4648 = vmatpush3.bf16.msra.mxu1 %v4788_v7 }
 0x1e8   : > { %4649 = vmatprep.subr.bf16.mxu1 %v4868_v29 }
 0x1e9   : > { %4668 = vmatpush3.bf16.msra.mxu0 %v4796_v18 }
 0x1ea   : > { %4669 = vmatprep.subr.bf16.mxu0 %v4868_v29 }
 0x1eb   : > { %4650 = vmatpush3.bf16.msra.mxu1 %v4789_v19 }
 0x1ec   : > { %4651 = vmatprep.subr.bf16.mxu1 %v4868_v29 }
 0x1ed   : > { %4670 = vmatpush3.bf16.msra.mxu0 %v4797_v41 }
 0x1ee   : > { %4671 = vmatprep.subr.bf16.mxu0 %v4868_v29 }
 0x1ef   : > { %4652 = vmatpush3.bf16.msra.mxu1 %v4790_v35 }
 0x1f1   : > { %4672 = vmatpush3.bf16.msra.mxu0 %v4798_v32 }
 0x1f2   : > { %4654 = vmatmul.mubr.msk.bf16.vlgmr.msra.gmra.mxu1 %vm2169_vm5, %v3810_v37 }
 0x264   : > { %v2825_v42 = vpop.f32.mrf.mxu0 }
 0x266   : > { %v4571_v50 = vpop.f32.mrf.mxu0 }
 0x268   : > { %v2828_v15 = vpop.f32.mrf.mxu0 }
 0x26a   : > { %v4572_v6 = vpop.f32.mrf.mxu0 }
 0x272   : > { %v2736_v28 = vpop.f32.mrf.mxu1 }
 0x273   : > { %v2826_v58 = vadd.f32 %v2825_v42, %v2736_v28  ;;  %v3925_v28 = vld [vmem:[%s5949_s8] sm:$0x1] }
 0x274   : > { %v4559_v34 = vpop.f32.mrf.mxu1  ;;  %v3084_v33 = vpop.f32.mrf.mxu0 }
 0x276   : > { %v2739_v46 = vpop.f32.mrf.mxu1  ;;  %v4595_v59 = vpop.f32.mrf.mxu0 }
 0x277   : > { %v2829_v2 = vadd.f32 %v2828_v15, %v2739_v46 }
 0x278   : > { %v4560_v49 = vpop.f32.mrf.mxu1  ;;  %v3087_v48 = vpop.f32.mrf.mxu0 }
 0x27a   : > { %v4596_v60 = vpop.f32.mrf.mxu0 }
 0x282   : > { %v2981_v25 = vpop.f32.mrf.mxu1 }
 0x283   : > { %v2988_v54 = vadd.f32 %v2981_v25, %v2826_v58 }
 0x284   : > { %v4583_v8 = vpop.f32.mrf.mxu1  ;;  %v3426_v40 = vpop.f32.mrf.mxu0 }
 0x285   : > { %v3091_v36 = vadd.f32 %v3084_v33, %v2988_v54 }
 0x286   : > { %v2984_v63 = vpop.f32.mrf.mxu1  ;;  %v4619_v51 = vpop.f32.mrf.mxu0 }
 0x287   : > { %v2989_v22 = vadd.f32 %v2984_v63, %v2829_v2 }
 0x288   : > { %v4584_v5 = vpop.f32.mrf.mxu1  ;;  %v3429_v29 = vpop.f32.mrf.mxu0 }
 0x289   : > { %v3092_v30 = vadd.f32 %v3087_v48, %v2989_v22 }
 0x28a   : > { %v4620_v0 = vpop.f32.mrf.mxu0 }
 0x292   : > { %v3275_v52 = vpop.f32.mrf.mxu1 }
 0x293   : > { %v3282_v13 = vadd.f32 %v3275_v52, %v3091_v36 }
 0x294   : > { %v4607_v9 = vpop.f32.mrf.mxu1  ;;  %v3721_v53 = vpop.f32.mrf.mxu0 }
 0x295   : > { %v3433_v43 = vadd.f32 %v3426_v40, %v3282_v13 }
 0x296   : > { %v3278_v44 = vpop.f32.mrf.mxu1  ;;  %v4643_v20 = vpop.f32.mrf.mxu0 }
 0x297   : > { %v3283_v12 = vadd.f32 %v3278_v44, %v3092_v30 }
 0x298   : > { %v4608_v14 = vpop.f32.mrf.mxu1  ;;  %v3724_v21 = vpop.f32.mrf.mxu0 }
 0x299   : > { %v3434_v62 = vadd.f32 %v3429_v29, %v3283_v12 }
 0x29a   : > { %v4644_v27 = vpop.f32.mrf.mxu0 }
 0x2a2   : > { %v3530_v11 = vpop.f32.mrf.mxu1 }
 0x2a3   : > { %v3537_v56 = vadd.f32 %v3530_v11, %v3433_v43 }
 0x2a4   : > { %v4631_v55 = vpop.f32.mrf.mxu1 }
 0x2a5   : > { %v3728_v57 = vadd.f32 %v3721_v53, %v3537_v56 }
 0x2a6   : > { %v3533_v45 = vpop.f32.mrf.mxu1 }
 0x2a7   : > { %v3538_v17 = vadd.f32 %v3533_v45, %v3434_v62 }
 0x2a8   : > { %v4632_v23 = vpop.f32.mrf.mxu1 }
 0x2a9   : > { %v3729_v19 = vadd.f32 %v3724_v21, %v3538_v17 }
 0x2b2   : > { %v3872_v31 = vpop.f32.mrf.mxu1 }
 0x2b3   : > { %v3879_v7 = vadd.f32 %v3872_v31, %v3728_v57 }
 0x2b4   : > { %v4655_v47 = vpop.f32.mrf.mxu1 }
 0x2b5   : > { %v3888_v39 = vmul.f32 %v4303_v16, %v3879_v7 }
 0x2b6   : > { %v3875_v24 = vpop.f32.mrf.mxu1 }
 0x2b7   : > { %v3880_v35 = vadd.f32 %v3875_v24, %v3729_v19  ;;  %v3897_v37 = vadd.f32 %v4304_v61, %v3888_v39 }
 0x2b8   : > { %v4656_v1 = vpop.f32.mrf.mxu1 }
 0x2b9   : > { %v3889_v26 = vmul.f32 %v4303_v16, %v3880_v35  ;;  %v3899_v3 = vmax.f32 %v3897_v37, 0.0 }
 0x2bb   : > { %v3898_v10 = vadd.f32 %v4304_v61, %v3889_v26 }
 0x2bd   : > { %v3900_v4 = vmax.f32 %v3898_v10, 0.0 }
 0x2bf   : > { %v3901_v38 = vadd.f32 %v3900_v4, %v3899_v3 }
 0x2c1   : > { %v3902_v18 = vrot.slane %v3901_v38, 4 }
 0x2c3   : > { %v3903_v41 = vadd.f32 %v3902_v18, %v3901_v38 }
 0x2c5   : > { %v3904_v32 = vrot.slane %v3903_v41, 2 }
 0x2c7   : > { %v3905_v42 = vadd.f32 %v3904_v32, %v3903_v41 }
 0x2c9   : > { %v3906_v50 = vrot.slane %v3905_v42, 1 }
 0x2cb   : > { %v3907_v15 = vadd.f32 %v3906_v50, %v3905_v42 }
 0x2cd   : > { %v3908_v6 = vpack.c.bf16 %v3907_v15, %v3907_v15 }
 0x2cf   : > { %4674 = vmatmul.mubr.bf16.vlgmr.msra.gmra.mxu0 %v3908_v6 }
 0x38f   : > { %v4008_v34 = vpop.f32.mrf.mxu0 }
 0x390   : > { %v4009_v46 = vadd.f32 %v4008_v34, %v3925_v28 }
 0x391   : > { %v4675_v33 = vpop.f32.mrf.mxu0 }
 0x392   : > { %4015 = vst.msk [vmem:[%s324_s29] sm:$0x1] %vm4014_vm2, %v4009_v46 }
 0x393   : > { %v4011_v49 = vpop.f32.mrf.mxu0 }
 0x394   : > { %4818 = shalt.err (!%p4815_p3)
}
 0x395   : > { %s4819_s14 = scalar_lea.hbm %s5900_s23, 16  ;;  %s4823_s29 = scalar_lea.hbm %s5950_s9, 32 }
 0x396   : > { %p4820_p4 = scmp.ne.s32.totalorder %s5900_s23, %s4819_s14  ;;  %p4824_p9 = scmp.lt.s32.totalorder %s5900_s23, %s5950_s9 }
 0x397   : > { %p4825_p10 = scmp.lt.s32.totalorder %s4823_s29, %s4819_s14 }
 0x398   : > { %p4821_p7 = pnand %p4820_p4, %p4960_p5 }
 0x399   : > { %p4826_p11 = por %p4825_p10, %p4824_p9 }
 0x39a   : > { %p4822_p8 = pneg %p4821_p7 }
 0x39c   : > { %p4827_p12 = pnand %p4826_p11, %p4822_p8 }
 0x39e   : > { %4830 = shalt.err (!%p4827_p12)
}
 0x39f   : > { %4677 = dma.vmem_to_hbm [thread:$0]  (%p4960_p5), %s5902_s17, 16, %s5900_s23, %s4017_s24   ;;  %v4676_v59 = vpop.f32.mrf.mxu0 }
 0x3a0 PF: > { %p4683_p13 = scmp.ge.s32.totalorder %s4865_s12, 2  ;;  %s4041_s13 = sand.u32 1, %s4853_s30  }
 0x3a1   : > { %s4042_s25 = scalar_lea.sflag [#allocation5], %s4041_s13 }
 0x3a2   : > { %p4680_p0 = pnand %p4683_p13, %p4964_p6 }
 0x3a4   : > { %p4681_p1 = pneg %p4680_p0 }
 0x3a6   : > { %4848 = dma.done.wait (%p4681_p1), %s4042_s25, 16  }
 0x3a7   : > { %4850 = vsyncadd (%p4681_p1), %s4042_s25, 4294967280  ;;  %p19_p2 = scmp.ge.s32.totalorder %s4947_s15, 4   ;;  %s5973_s30 = smov %s4857_s10 }
 0x3a8   : > { %s5974_s10 = smov %s4861_s11  ;;  %s5975_s11 = smov %s4958_s18 }
 0x3a9   : > { %s5976_s12 = smov %s4947_s15  ;;  %21 = sbr.rel (!%p19_p2) target bundleno = 3 (0x3), region = 97 }
 0x3ae   :  { %4046 = vsyncpa [#allocation5], 1 }
 0x3af   :  { %4048 = vsyncpa [#allocation5 + $0x1], 1 }

</bundles_post_ra>
